<compile_context>
chip_gen: v7x
topology: tpu7x:2x2x1
jax: 0.10.0
libtpu: 0.0.40
codegen_flags: <defaults>
</compile_context>

<pallas_src>
import functools

import jax
import jax.numpy as jnp
from jax.experimental import pallas as pl
from jax.experimental.pallas import tpu as pltpu


def _round_up(x, m):
    return ((x + m - 1) // m) * m


def _const_spec(shape):
    """Spec for a grid-invariant (weight/bias) input: full block, single-buffered."""
    nd = len(shape)
    index_map = lambda b, t, _nd=nd: (0,) * _nd
    try:
        return pl.BlockSpec(shape, index_map, pipeline_mode=pl.Buffered(1))
    except (TypeError, AttributeError):   # older jax without pipeline_mode kwarg
        return pl.BlockSpec(shape, index_map)


# ----------------------------- fused kernel ---------------------------------

def _tcn_fused_kernel(*refs, kernel_size, layer_meta, t_tile, use_col, use_pad):
    """All TCN blocks in one kernel; the (t_tile, C) activation stays in VMEM.

    refs = (x_ref, <per-layer weight refs...>, o_ref,
            [col_ref], [pad_ref], tails_ref)
    layer_meta: per layer (dilation, has_down, ci, co, fold1, fold2)  (static).

    The causal left-context between consecutive T-tiles is carried exactly in
    `tails_ref[slot]` (last (K-1)*d rows of each conv's input, 2 slots/layer).
    """
    n_scratch = 1 + int(use_col) + int(use_pad)
    scratch = refs[len(refs) - n_scratch:]
    si = 0
    col_ref = pad_ref = None
    if use_col:
        col_ref = scratch[si]; si += 1
    if use_pad:
        pad_ref = scratch[si]; si += 1
    tails_ref = scratch[si]

    x_ref = refs[0]
    o_ref = refs[len(refs) - n_scratch - 1]
    w_refs = refs[1:len(refs) - n_scratch - 1]

    @pl.when(pl.program_id(1) == 0)
    def _():
        # New batch element: the causal context is all zeros (left zero pad).
        tails_ref[...] = jnp.zeros(tails_ref.shape, tails_ref.dtype)

    def causal_conv(v_bf, w_ref, b_ref, dilation, slot, fold, cw):
        """Causal dilated conv over the (t_tile, cw) bf16 activation v_bf."""
        pad = (kernel_size - 1) * dilation
        if fold:
            # im2col fold: one (t_tile, K*cw) @ (K*cw, co) MXU matmul.
            for j in range(kernel_size):
                off = (kernel_size - 1 - j) * dilation
                if off > 0:   # context rows from the previous T-tile (or zeros)
                    col_ref[pl.ds(0, off), j * cw:(j + 1) * cw] = \
                        tails_ref[slot, pl.ds(pad - off, off), :cw]
                col_ref[pl.ds(off, t_tile), j * cw:(j + 1) * cw] = v_bf
            if pad > 0:       # carry this tile's trailing rows to the next tile
                tails_ref[slot, pl.ds(0, pad), :cw] = v_bf[t_tile - pad:, :]
            acc = jnp.dot(col_ref[pl.ds(0, t_tile), :kernel_size * cw],
                          w_ref[...], preferred_element_type=jnp.float32)
        else:
            # K shifted (t_tile, cw) @ (cw, co) matmuls off a left-padded slab.
            if pad > 0:
                pad_ref[pl.ds(0, pad), :cw] = tails_ref[slot, pl.ds(0, pad), :cw]
            pad_ref[pl.ds(pad, t_tile), :cw] = v_bf
            if pad > 0:
                tails_ref[slot, pl.ds(0, pad), :cw] = v_bf[t_tile - pad:, :]
            acc = jnp.dot(pad_ref[pl.ds(0, t_tile), :cw], w_ref[0],
                          preferred_element_type=jnp.float32)
            for j in range(1, kernel_size):
                acc = acc + jnp.dot(
                    pad_ref[pl.ds(j * dilation, t_tile), :cw], w_ref[j],
                    preferred_element_type=jnp.float32)
        return acc + b_ref[...]

    y = x_ref[...].astype(jnp.float32)            # (t_tile, ci0)

    wi = 0
    for li, (dilation, has_down, ci, co, fold1, fold2) in enumerate(layer_meta):
        w1, b1, w2, b2 = (w_refs[wi], w_refs[wi + 1],
                          w_refs[wi + 2], w_refs[wi + 3])
        wi += 4
        y_bf = y.astype(jnp.bfloat16)

        # Residual path: identity downsample is skipped statically.
        if has_down:
            wd, bd = w_refs[wi], w_refs[wi + 1]
            wi += 2
            res = jnp.dot(y_bf, wd[...],
                          preferred_element_type=jnp.float32) + bd[...]
        else:
            res = y

        h = jnp.maximum(
            causal_conv(y_bf, w1, b1, dilation, 2 * li, fold1, ci), 0.0)
        # TODO(synk): nn.Dropout is identity in eval mode; training-mode random
        #             masking is not implemented here.
        h2 = jnp.maximum(
            causal_conv(h.astype(jnp.bfloat16), w2, b2, dilation,
                        2 * li + 1, fold2, co), 0.0)
        y = jnp.maximum(h2 + res, 0.0)

    o_ref[...] = y.astype(o_ref.dtype)


# ------------------------------ host wrapper ---------------------------------

def tcn_encoder(x, params, *, kernel_size, t_tile=None, fold_taps=True):
    """Fused TCNEncoder forward.

    x: (B, T, in_ch) float32, channels-last.
    params: list of (w1, b1, w2, b2, wd_or_None, bd_or_None) per layer, conv
        weights in (K, Cin, Cout) layout (weight_norm already folded in).
    fold_taps: fold the K dilated taps into one matmul when the conv input
        width pads to 128 (recommended on v6e/v7x; pass False on v5e).
    Returns (B, T, channels[-1]) float32.
    """
    B, T, in_ch = x.shape
    n_layers = len(params)
    chans = [in_ch] + [p[0].shape[-1] for p in params]
    ci_pads = [_round_up(c, 128) for c in chans[:-1]]
    co_pads = [_round_up(c, 128) for c in chans[1:]]
    dils = [2 ** i for i in range(n_layers)]
    max_pad = (kernel_size - 1) * dils[-1]

    # ---- T tiling (bounds per-step VMEM; exact via carried tails) -----------
    if t_tile is None:
        t_tile = min(_round_up(T, 16), 2048)
    t_tile = _round_up(max(t_tile, max_pad, 16), 16)
    T_pad = _round_up(T, t_tile)          # trailing zero rows never affect t<T
    nT = T_pad // t_tile

    # ---- padded inputs (bf16 input halves the x DMA; zero pad lanes) --------
    x_p = (jnp.zeros((B, T_pad, ci_pads[0]), jnp.bfloat16)
           .at[:, :T, :in_ch].set(x.astype(jnp.bfloat16)))

    def pad2(a, r, c, dtype):
        return (jnp.zeros((r, c), dtype)
                .at[:a.shape[0], :a.shape[1]].set(a.astype(dtype)))

    def conv_w(w, cin_p, cout_p, fold):
        wp = (jnp.zeros((kernel_size, cin_p, cout_p), jnp.bfloat16)
              .at[:, :w.shape[1], :w.shape[2]].set(w.astype(jnp.bfloat16)))
        return wp.reshape(kernel_size * cin_p, cout_p) if fold else wp

    flat_inputs = []
    in_specs = [pl.BlockSpec((None, t_tile, ci_pads[0]),
                             lambda b, t: (b, t, 0))]
    layer_meta = []

    for i, (w1, b1, w2, b2, wd, bd) in enumerate(params):
        ci, co = ci_pads[i], co_pads[i]
        fold1 = fold_taps and ci <= 128
        fold2 = fold_taps and co <= 128
        has_down = wd is not None
        layer_meta.append((dils[i], has_down, ci, co, fold1, fold2))

        arrs = [conv_w(w1, ci, co, fold1), pad2(b1, 1, co, jnp.float32),
                conv_w(w2, co, co, fold2), pad2(b2, 1, co, jnp.float32)]
        if has_down:
            arrs += [pad2(wd, ci, co, jnp.bfloat16),
                     pad2(bd, 1, co, jnp.float32)]
        for a in arrs:
            flat_inputs.append(a)
            in_specs.append(_const_spec(a.shape))

    # ---- scratch sizing ------------------------------------------------------
    use_col = any(f1 or f2 for (_, _, _, _, f1, f2) in layer_meta)
    unfold_w = ([ci for (_, _, ci, _, f1, _) in layer_meta if not f1] +
                [co for (_, _, _, co, _, f2) in layer_meta if not f2])
    use_pad = len(unfold_w) > 0
    col_w = kernel_size * 128
    pad_w = max(unfold_w) if use_pad else 0
    c_scratch = max(ci_pads + co_pads)
    slab_rows = _round_up(max_pad + t_tile, 16)
    tail_rows = _round_up(max(max_pad, 8), 16)

    scratch_shapes = []
    if use_col:
        scratch_shapes.append(pltpu.VMEM((slab_rows, col_w), jnp.bfloat16))
    if use_pad:
        scratch_shapes.append(pltpu.VMEM((slab_rows, pad_w), jnp.bfloat16))
    scratch_shapes.append(
        pltpu.VMEM((2 * n_layers, tail_rows, c_scratch), jnp.bfloat16))

    # ---- VMEM budget: blocks + weights + scratch + live f32 temporaries -----
    w_bytes = sum(int(a.size) * a.dtype.itemsize for a in flat_inputs)
    c_max = max(ci_pads + co_pads)
    block_bytes = 2 * t_tile * ci_pads[0] * 2 + 2 * t_tile * co_pads[-1] * 4
    scratch_bytes = (2 * n_layers * tail_rows * c_scratch * 2
                     + (slab_rows * col_w * 2 if use_col else 0)
                     + (slab_rows * pad_w * 2 if use_pad else 0))
    temp_bytes = 8 * t_tile * c_max * 4            # y/res/acc/h/... f32 values
    need = block_bytes + 2 * w_bytes + scratch_bytes + temp_bytes + (2 << 20)
    try:
        vmem_cap = int(pltpu.get_tpu_info().vmem_capacity_bytes)
    except Exception:
        vmem_cap = 64 << 20                         # conservative fallback
    vmem_limit = int(min(max(need, 16 << 20), int(vmem_cap * 0.9)))

    # ---- advisory cost estimate ---------------------------------------------
    flops = 0
    for i in range(n_layers):
        ci, co = ci_pads[i], co_pads[i]
        flops += 2 * T_pad * kernel_size * ci * co          # conv1
        flops += 2 * T_pad * kernel_size * co * co          # conv2
        if layer_meta[i][1]:
            flops += 2 * T_pad * ci * co                    # downsample
    flops *= B
    cost = pl.CostEstimate(
        flops=int(flops), transcendentals=0,
        bytes_accessed=int(x_p.size * 2 + B * T_pad * co_pads[-1] * 4
                           + w_bytes))

    kernel = functools.partial(
        _tcn_fused_kernel, kernel_size=kernel_size,
        layer_meta=tuple(layer_meta), t_tile=t_tile,
        use_col=use_col, use_pad=use_pad)

    y = pl.pallas_call(
        kernel,
        out_shape=jax.ShapeDtypeStruct((B, T_pad, co_pads[-1]), jnp.float32),
        grid_spec=pltpu.PrefetchScalarGridSpec(
            num_scalar_prefetch=0,
            grid=(B, nT),
            in_specs=in_specs,
            out_specs=pl.BlockSpec((None, t_tile, co_pads[-1]),
                                   lambda b, t: (b, t, 0)),
            scratch_shapes=scratch_shapes,
        ),
        compiler_params=pltpu.CompilerParams(
            dimension_semantics=("parallel", "arbitrary"),
            vmem_limit_bytes=vmem_limit,
        ),
        cost_estimate=cost,
    )(x_p, *flat_inputs)

    return y[:, :T, :chans[-1]]


# -------------------- deterministic parameter init ---------------------------

def _weight_norm(v):
    # PyTorch weight_norm(dim=0): per-output-channel norm over (K, Cin). g is
    # initialized to ||v|| so the effective weight equals v at init.
    norm = jnp.sqrt(jnp.sum(v * v, axis=(0, 1), keepdims=True))
    return norm * v / jnp.maximum(norm, 1e-12)


def init_tcn_params(key, in_ch, channels, kernel_size):
    params = []
    prev = in_ch
    for ch in channels:
        key, k1, k2, k3, k4, k5, k6 = jax.random.split(key, 7)
        w1 = _weight_norm(jax.random.normal(k1, (kernel_size, prev, ch),
                                            jnp.float32) * 0.1)
        b1 = jax.random.normal(k2, (1, ch), jnp.float32) * 0.1
        w2 = _weight_norm(jax.random.normal(k3, (kernel_size, ch, ch),
                                            jnp.float32) * 0.1)
        b2 = jax.random.normal(k4, (1, ch), jnp.float32) * 0.1
        if prev != ch:
            wd = jax.random.normal(k5, (prev, ch), jnp.float32) * 0.1
            bd = jax.random.normal(k6, (1, ch), jnp.float32) * 0.1
        else:
            wd, bd = None, None    # nn.Identity: skipped in the kernel
        params.append((w1, b1, w2, b2, wd, bd))
        prev = ch
    return params


# -------------------- pure-JAX references for validation ---------------------

def _matmul_ref(a, w, bf16):
    if bf16:
        a = a.astype(jnp.bfloat16)
        w = w.astype(jnp.bfloat16)
    return jnp.einsum('btc,cd->btd', a, w, preferred_element_type=jnp.float32)


def _causal_conv_ref(x, w, b, dilation, bf16):
    B, T, _ = x.shape
    K = w.shape[0]
    pad = (K - 1) * dilation
    xp = jnp.pad(x, ((0, 0), (pad, 0), (0, 0)))
    out = jnp.zeros((B, T, w.shape[-1]), jnp.float32)
    for j in range(K):
        out = out + _matmul_ref(xp[:, j * dilation:j * dilation + T, :], w[j],
                                bf16)
    return out + b


def tcn_ref(x, params, *, kernel_size, bf16_matmul=True):
    y = x
    for i, (w1, b1, w2, b2, wd, bd) in enumerate(params):
        d = 2 ** i
        res = y if wd is None else _matmul_ref(y, wd, bf16_matmul) + bd
        h = jax.nn.relu(_causal_conv_ref(y, w1, b1, d, bf16_matmul))
        h = jax.nn.relu(_causal_conv_ref(h, w2, b2, d, bf16_matmul))
        y = jax.nn.relu(h + res)
    return y


if __name__ == "__main__":
    key = jax.random.PRNGKey(0)
    kx, kp = jax.random.split(key)

    B, T, in_ch = 2, 48, 4
    channels = [8, 16, 16]
    kernel_size = 3

    x = jax.random.normal(kx, (B, T, in_ch), jnp.float32)
    params = init_tcn_params(kp, in_ch, channels, kernel_size)

    # References: same precision contract (bf16 matmul operands, bf16 input),
    # plus a full-fp32 reference for a loose sanity check.
    x_r = x.astype(jnp.bfloat16).astype(jnp.float32)
    y_bf = tcn_ref(x_r, params, kernel_size=kernel_size, bf16_matmul=True)
    y_f32 = tcn_ref(x, params, kernel_size=kernel_size, bf16_matmul=False)

    # 1) T-tiled run (3 tiles of 16 rows -> exercises the carried causal
    #    context) with the im2col tap fold (all widths pad to 128).
    y = jax.block_until_ready(
        tcn_encoder(x, params, kernel_size=kernel_size, t_tile=16))
    assert y.shape == (B, T, channels[-1]), y.shape
    assert jnp.allclose(y, y_bf, atol=1e-4, rtol=1e-3), \
        float(jnp.max(jnp.abs(y - y_bf)))
    assert jnp.allclose(y, y_f32, atol=5e-2, rtol=5e-2), \
        float(jnp.max(jnp.abs(y - y_f32)))

    # 2) Same shapes, per-tap matmul path (fold_taps=False, e.g. for v5e).
    y2 = jax.block_until_ready(
        tcn_encoder(x, params, kernel_size=kernel_size, t_tile=16,
                    fold_taps=False))
    assert jnp.allclose(y2, y_bf, atol=1e-4, rtol=1e-3), \
        float(jnp.max(jnp.abs(y2 - y_bf)))

    # 3) Single-tile path (auto t_tile -> whole sequence in one grid step).
    y3 = jax.block_until_ready(
        tcn_encoder(x, params, kernel_size=kernel_size))
    assert jnp.allclose(y3, y_bf, atol=1e-4, rtol=1e-3), \
        float(jnp.max(jnp.abs(y3 - y_bf)))

    print("KERNEL_OK")
</pallas_src>

<mosaic_0001>
module attributes {stable_mosaic.version = 11 : i64} {
  func.func @_tcn_fused_kernel(%arg0: i32, %arg1: i32, %arg2: memref<1x16x128xbf16, #tpu.memory_space<vmem>>, %arg3: memref<384x128xbf16, #tpu.memory_space<vmem>>, %arg4: memref<1x128xf32, #tpu.memory_space<vmem>>, %arg5: memref<384x128xbf16, #tpu.memory_space<vmem>>, %arg6: memref<1x128xf32, #tpu.memory_space<vmem>>, %arg7: memref<128x128xbf16, #tpu.memory_space<vmem>>, %arg8: memref<1x128xf32, #tpu.memory_space<vmem>>, %arg9: memref<384x128xbf16, #tpu.memory_space<vmem>>, %arg10: memref<1x128xf32, #tpu.memory_space<vmem>>, %arg11: memref<384x128xbf16, #tpu.memory_space<vmem>>, %arg12: memref<1x128xf32, #tpu.memory_space<vmem>>, %arg13: memref<128x128xbf16, #tpu.memory_space<vmem>>, %arg14: memref<1x128xf32, #tpu.memory_space<vmem>>, %arg15: memref<384x128xbf16, #tpu.memory_space<vmem>>, %arg16: memref<1x128xf32, #tpu.memory_space<vmem>>, %arg17: memref<384x128xbf16, #tpu.memory_space<vmem>>, %arg18: memref<1x128xf32, #tpu.memory_space<vmem>>, %arg19: memref<1x16x128xf32, #tpu.memory_space<vmem>>, %arg20: memref<32x384xbf16, #tpu.memory_space<vmem>>, %arg21: memref<6x16x128xbf16, #tpu.memory_space<vmem>>) attributes {dimension_semantics = [#tpu.dimension_semantics<parallel>, #tpu.dimension_semantics<arbitrary>], iteration_bounds = array<i64: 2, 3>, scalar_prefetch = 0 : i64, scratch_operands = 2 : i64, tpu.core_type = #tpu.core_type<tc>, window_params = [{transform_indices = @transform_0, window_bounds = array<i64: 1, 16, 128>}, {pipeline_mode = #tpu.pipeline_mode<synchronous>, transform_indices = @transform_1, window_bounds = array<i64: 384, 128>}, {pipeline_mode = #tpu.pipeline_mode<synchronous>, transform_indices = @transform_2, window_bounds = array<i64: 1, 128>}, {pipeline_mode = #tpu.pipeline_mode<synchronous>, transform_indices = @transform_3, window_bounds = array<i64: 384, 128>}, {pipeline_mode = #tpu.pipeline_mode<synchronous>, transform_indices = @transform_4, window_bounds = array<i64: 1, 128>}, {pipeline_mode = #tpu.pipeline_mode<synchronous>, transform_indices = @transform_5, window_bounds = array<i64: 128, 128>}, {pipeline_mode = #tpu.pipeline_mode<synchronous>, transform_indices = @transform_6, window_bounds = array<i64: 1, 128>}, {pipeline_mode = #tpu.pipeline_mode<synchronous>, transform_indices = @transform_7, window_bounds = array<i64: 384, 128>}, {pipeline_mode = #tpu.pipeline_mode<synchronous>, transform_indices = @transform_8, window_bounds = array<i64: 1, 128>}, {pipeline_mode = #tpu.pipeline_mode<synchronous>, transform_indices = @transform_9, window_bounds = array<i64: 384, 128>}, {pipeline_mode = #tpu.pipeline_mode<synchronous>, transform_indices = @transform_10, window_bounds = array<i64: 1, 128>}, {pipeline_mode = #tpu.pipeline_mode<synchronous>, transform_indices = @transform_11, window_bounds = array<i64: 128, 128>}, {pipeline_mode = #tpu.pipeline_mode<synchronous>, transform_indices = @transform_12, window_bounds = array<i64: 1, 128>}, {pipeline_mode = #tpu.pipeline_mode<synchronous>, transform_indices = @transform_13, window_bounds = array<i64: 384, 128>}, {pipeline_mode = #tpu.pipeline_mode<synchronous>, transform_indices = @transform_14, window_bounds = array<i64: 1, 128>}, {pipeline_mode = #tpu.pipeline_mode<synchronous>, transform_indices = @transform_15, window_bounds = array<i64: 384, 128>}, {pipeline_mode = #tpu.pipeline_mode<synchronous>, transform_indices = @transform_16, window_bounds = array<i64: 1, 128>}, {transform_indices = @transform_17, window_bounds = array<i64: 1, 16, 128>}]} {
    %c0_i32 = arith.constant 0 : i32
    %0 = arith.cmpi eq, %arg1, %c0_i32 : i32
    %1 = arith.extui %0 : i1 to i32
    %c0_i32_0 = arith.constant 0 : i32
    %2 = arith.cmpi ne, %1, %c0_i32_0 : i32
    scf.if %2 {
      %cst_172 = arith.constant 0.000000e+00 : bf16
      %160 = vector.broadcast %cst_172 : bf16 to vector<6x16x128xbf16>
      %c0_173 = arith.constant 0 : index
      %c0_174 = arith.constant 0 : index
      %c0_175 = arith.constant 0 : index
      %161 = vector.load %arg21[%c0_173, %c0_174, %c0_175] : memref<6x16x128xbf16, #tpu.memory_space<vmem>>, vector<6x16x128xbf16>
      tpu.vector_store %arg21[%c0_173, %c0_174, %c0_175], %160 {strides = array<i32>} : memref<6x16x128xbf16, #tpu.memory_space<vmem>>, vector<6x16x128xbf16>,
    } else {
    }
    %c0 = arith.constant 0 : index
    %c0_1 = arith.constant 0 : index
    %c0_2 = arith.constant 0 : index
    %3 = vector.load %arg2[%c0, %c0_1, %c0_2] : memref<1x16x128xbf16, #tpu.memory_space<vmem>>, vector<1x16x128xbf16>
    %4 = vector.shape_cast %3 : vector<1x16x128xbf16> to vector<16x128xbf16>
    %5 = arith.extf %4 : vector<16x128xbf16> to vector<16x128xf32>
    %6 = arith.truncf %5 : vector<16x128xf32> to vector<16x128xbf16>
    %c0_3 = arith.constant 0 : index
    %c0_4 = arith.constant 0 : index
    %7 = vector.load %arg7[%c0_3, %c0_4] : memref<128x128xbf16, #tpu.memory_space<vmem>>, vector<128x128xbf16>
    %cst = arith.constant dense<0.000000e+00> : vector<16x128xf32>
    %8 = tpu.matmul %6, %7, %cst {dimension_numbers = #tpu.dot_dimension_numbers<[1], [0], [0], [1], [0, 0, 1, 1], [], []>} : vector<16x128xbf16>, vector<128x128xbf16>, vector<16x128xf32> -> vector<16x128xf32>
    %c0_5 = arith.constant 0 : index
    %c0_6 = arith.constant 0 : index
    %9 = vector.load %arg8[%c0_5, %c0_6] : memref<1x128xf32, #tpu.memory_space<vmem>>, vector<1x128xf32>
    %10 = vector.broadcast %9 : vector<1x128xf32> to vector<16x128xf32>
    %11 = arith.addf %8, %10 : vector<16x128xf32>
    %c0_7 = arith.constant 0 : index
    %c0_8 = arith.constant 0 : index
    %c0_9 = arith.constant 0 : index
    %12 = vector.load %arg21[%c0_7, %c0_8, %c0_9] : memref<6x16x128xbf16, #tpu.memory_space<vmem>>, vector<1x2x128xbf16>
    %13 = vector.shape_cast %12 : vector<1x2x128xbf16> to vector<2x128xbf16>
    %c0_10 = arith.constant 0 : index
    %c0_11 = arith.constant 0 : index
    %14 = vector.load %arg20[%c0_10, %c0_11] : memref<32x384xbf16, #tpu.memory_space<vmem>>, vector<2x128xbf16>
    tpu.vector_store %arg20[%c0_10, %c0_11], %13 {strides = array<i32>} : memref<32x384xbf16, #tpu.memory_space<vmem>>, vector<2x128xbf16>,
    %c2 = arith.constant 2 : index
    %c0_12 = arith.constant 0 : index
    %15 = vector.load %arg20[%c2, %c0_12] : memref<32x384xbf16, #tpu.memory_space<vmem>>, vector<16x128xbf16>
    tpu.vector_store %arg20[%c2, %c0_12], %6 {strides = array<i32>} : memref<32x384xbf16, #tpu.memory_space<vmem>>, vector<16x128xbf16>,
    %c0_13 = arith.constant 0 : index
    %c1 = arith.constant 1 : index
    %c0_14 = arith.constant 0 : index
    %16 = vector.load %arg21[%c0_13, %c1, %c0_14] : memref<6x16x128xbf16, #tpu.memory_space<vmem>>, vector<1x1x128xbf16>
    %17 = vector.shape_cast %16 : vector<1x1x128xbf16> to vector<1x128xbf16>
    %c0_15 = arith.constant 0 : index
    %c128 = arith.constant 128 : index
    %18 = vector.load %arg20[%c0_15, %c128] : memref<32x384xbf16, #tpu.memory_space<vmem>>, vector<1x128xbf16>
    tpu.vector_store %arg20[%c0_15, %c128], %17 {strides = array<i32>} : memref<32x384xbf16, #tpu.memory_space<vmem>>, vector<1x128xbf16>,
    %c1_16 = arith.constant 1 : index
    %c128_17 = arith.constant 128 : index
    %19 = vector.load %arg20[%c1_16, %c128_17] : memref<32x384xbf16, #tpu.memory_space<vmem>>, vector<16x128xbf16>
    tpu.vector_store %arg20[%c1_16, %c128_17], %6 {strides = array<i32>} : memref<32x384xbf16, #tpu.memory_space<vmem>>, vector<16x128xbf16>,
    %c0_18 = arith.constant 0 : index
    %c256 = arith.constant 256 : index
    %20 = vector.load %arg20[%c0_18, %c256] : memref<32x384xbf16, #tpu.memory_space<vmem>>, vector<16x128xbf16>
    tpu.vector_store %arg20[%c0_18, %c256], %6 {strides = array<i32>} : memref<32x384xbf16, #tpu.memory_space<vmem>>, vector<16x128xbf16>,
    %21 = vector.extract_strided_slice %6 {offsets = [14, 0], sizes = [2, 128], strides = [1, 1]} : vector<16x128xbf16> to vector<2x128xbf16>
    %c0_19 = arith.constant 0 : index
    %c0_20 = arith.constant 0 : index
    %c0_21 = arith.constant 0 : index
    %22 = vector.load %arg21[%c0_19, %c0_20, %c0_21] : memref<6x16x128xbf16, #tpu.memory_space<vmem>>, vector<1x2x128xbf16>
    %23 = vector.shape_cast %22 : vector<1x2x128xbf16> to vector<2x128xbf16>
    %24 = vector.shape_cast %21 : vector<2x128xbf16> to vector<1x2x128xbf16>
    tpu.vector_store %arg21[%c0_19, %c0_20, %c0_21], %24 {strides = array<i32>} : memref<6x16x128xbf16, #tpu.memory_space<vmem>>, vector<1x2x128xbf16>,
    %c0_22 = arith.constant 0 : index
    %c0_23 = arith.constant 0 : index
    %25 = vector.load %arg20[%c0_22, %c0_23] : memref<32x384xbf16, #tpu.memory_space<vmem>>, vector<16x384xbf16>
    %c0_24 = arith.constant 0 : index
    %c0_25 = arith.constant 0 : index
    %26 = vector.load %arg3[%c0_24, %c0_25] : memref<384x128xbf16, #tpu.memory_space<vmem>>, vector<384x128xbf16>
    %cst_26 = arith.constant dense<0.000000e+00> : vector<16x128xf32>
    %27 = tpu.matmul %25, %26, %cst_26 {dimension_numbers = #tpu.dot_dimension_numbers<[1], [0], [0], [1], [0, 0, 1, 1], [], []>} : vector<16x384xbf16>, vector<384x128xbf16>, vector<16x128xf32> -> vector<16x128xf32>
    %c0_27 = arith.constant 0 : index
    %c0_28 = arith.constant 0 : index
    %28 = vector.load %arg4[%c0_27, %c0_28] : memref<1x128xf32, #tpu.memory_space<vmem>>, vector<1x128xf32>
    %29 = vector.broadcast %28 : vector<1x128xf32> to vector<16x128xf32>
    %30 = arith.addf %27, %29 : vector<16x128xf32>
    %cst_29 = arith.constant 0.000000e+00 : f32
    %31 = vector.broadcast %cst_29 : f32 to vector<16x128xf32>
    %32 = arith.maximumf %30, %31 : vector<16x128xf32>
    %33 = arith.truncf %32 : vector<16x128xf32> to vector<16x128xbf16>
    %c1_30 = arith.constant 1 : index
    %c0_31 = arith.constant 0 : index
    %c0_32 = arith.constant 0 : index
    %34 = vector.load %arg21[%c1_30, %c0_31, %c0_32] : memref<6x16x128xbf16, #tpu.memory_space<vmem>>, vector<1x2x128xbf16>
    %35 = vector.shape_cast %34 : vector<1x2x128xbf16> to vector<2x128xbf16>
    %c0_33 = arith.constant 0 : index
    %c0_34 = arith.constant 0 : index
    %36 = vector.load %arg20[%c0_33, %c0_34] : memref<32x384xbf16, #tpu.memory_space<vmem>>, vector<2x128xbf16>
    tpu.vector_store %arg20[%c0_33, %c0_34], %35 {strides = array<i32>} : memref<32x384xbf16, #tpu.memory_space<vmem>>, vector<2x128xbf16>,
    %c2_35 = arith.constant 2 : index
    %c0_36 = arith.constant 0 : index
    %37 = vector.load %arg20[%c2_35, %c0_36] : memref<32x384xbf16, #tpu.memory_space<vmem>>, vector<16x128xbf16>
    tpu.vector_store %arg20[%c2_35, %c0_36], %33 {strides = array<i32>} : memref<32x384xbf16, #tpu.memory_space<vmem>>, vector<16x128xbf16>,
    %c1_37 = arith.constant 1 : index
    %c1_38 = arith.constant 1 : index
    %c0_39 = arith.constant 0 : index
    %38 = vector.load %arg21[%c1_37, %c1_38, %c0_39] : memref<6x16x128xbf16, #tpu.memory_space<vmem>>, vector<1x1x128xbf16>
    %39 = vector.shape_cast %38 : vector<1x1x128xbf16> to vector<1x128xbf16>
    %c0_40 = arith.constant 0 : index
    %c128_41 = arith.constant 128 : index
    %40 = vector.load %arg20[%c0_40, %c128_41] : memref<32x384xbf16, #tpu.memory_space<vmem>>, vector<1x128xbf16>
    tpu.vector_store %arg20[%c0_40, %c128_41], %39 {strides = array<i32>} : memref<32x384xbf16, #tpu.memory_space<vmem>>, vector<1x128xbf16>,
    %c1_42 = arith.constant 1 : index
    %c128_43 = arith.constant 128 : index
    %41 = vector.load %arg20[%c1_42, %c128_43] : memref<32x384xbf16, #tpu.memory_space<vmem>>, vector<16x128xbf16>
    tpu.vector_store %arg20[%c1_42, %c128_43], %33 {strides = array<i32>} : memref<32x384xbf16, #tpu.memory_space<vmem>>, vector<16x128xbf16>,
    %c0_44 = arith.constant 0 : index
    %c256_45 = arith.constant 256 : index
    %42 = vector.load %arg20[%c0_44, %c256_45] : memref<32x384xbf16, #tpu.memory_space<vmem>>, vector<16x128xbf16>
    tpu.vector_store %arg20[%c0_44, %c256_45], %33 {strides = array<i32>} : memref<32x384xbf16, #tpu.memory_space<vmem>>, vector<16x128xbf16>,
    %43 = vector.extract_strided_slice %33 {offsets = [14, 0], sizes = [2, 128], strides = [1, 1]} : vector<16x128xbf16> to vector<2x128xbf16>
    %c1_46 = arith.constant 1 : index
    %c0_47 = arith.constant 0 : index
    %c0_48 = arith.constant 0 : index
    %44 = vector.load %arg21[%c1_46, %c0_47, %c0_48] : memref<6x16x128xbf16, #tpu.memory_space<vmem>>, vector<1x2x128xbf16>
    %45 = vector.shape_cast %44 : vector<1x2x128xbf16> to vector<2x128xbf16>
    %46 = vector.shape_cast %43 : vector<2x128xbf16> to vector<1x2x128xbf16>
    tpu.vector_store %arg21[%c1_46, %c0_47, %c0_48], %46 {strides = array<i32>} : memref<6x16x128xbf16, #tpu.memory_space<vmem>>, vector<1x2x128xbf16>,
    %c0_49 = arith.constant 0 : index
    %c0_50 = arith.constant 0 : index
    %47 = vector.load %arg20[%c0_49, %c0_50] : memref<32x384xbf16, #tpu.memory_space<vmem>>, vector<16x384xbf16>
    %c0_51 = arith.constant 0 : index
    %c0_52 = arith.constant 0 : index
    %48 = vector.load %arg5[%c0_51, %c0_52] : memref<384x128xbf16, #tpu.memory_space<vmem>>, vector<384x128xbf16>
    %cst_53 = arith.constant dense<0.000000e+00> : vector<16x128xf32>
    %49 = tpu.matmul %47, %48, %cst_53 {dimension_numbers = #tpu.dot_dimension_numbers<[1], [0], [0], [1], [0, 0, 1, 1], [], []>} : vector<16x384xbf16>, vector<384x128xbf16>, vector<16x128xf32> -> vector<16x128xf32>
    %c0_54 = arith.constant 0 : index
    %c0_55 = arith.constant 0 : index
    %50 = vector.load %arg6[%c0_54, %c0_55] : memref<1x128xf32, #tpu.memory_space<vmem>>, vector<1x128xf32>
    %51 = vector.broadcast %50 : vector<1x128xf32> to vector<16x128xf32>
    %52 = arith.addf %49, %51 : vector<16x128xf32>
    %cst_56 = arith.constant 0.000000e+00 : f32
    %53 = vector.broadcast %cst_56 : f32 to vector<16x128xf32>
    %54 = arith.maximumf %52, %53 : vector<16x128xf32>
    %55 = arith.addf %54, %11 : vector<16x128xf32>
    %cst_57 = arith.constant 0.000000e+00 : f32
    %56 = vector.broadcast %cst_57 : f32 to vector<16x128xf32>
    %57 = arith.maximumf %55, %56 : vector<16x128xf32>
    %58 = arith.truncf %57 : vector<16x128xf32> to vector<16x128xbf16>
    %c0_58 = arith.constant 0 : index
    %c0_59 = arith.constant 0 : index
    %59 = vector.load %arg13[%c0_58, %c0_59] : memref<128x128xbf16, #tpu.memory_space<vmem>>, vector<128x128xbf16>
    %cst_60 = arith.constant dense<0.000000e+00> : vector<16x128xf32>
    %60 = tpu.matmul %58, %59, %cst_60 {dimension_numbers = #tpu.dot_dimension_numbers<[1], [0], [0], [1], [0, 0, 1, 1], [], []>} : vector<16x128xbf16>, vector<128x128xbf16>, vector<16x128xf32> -> vector<16x128xf32>
    %c0_61 = arith.constant 0 : index
    %c0_62 = arith.constant 0 : index
    %61 = vector.load %arg14[%c0_61, %c0_62] : memref<1x128xf32, #tpu.memory_space<vmem>>, vector<1x128xf32>
    %62 = vector.broadcast %61 : vector<1x128xf32> to vector<16x128xf32>
    %63 = arith.addf %60, %62 : vector<16x128xf32>
    %c2_63 = arith.constant 2 : index
    %c0_64 = arith.constant 0 : index
    %c0_65 = arith.constant 0 : index
    %64 = vector.load %arg21[%c2_63, %c0_64, %c0_65] : memref<6x16x128xbf16, #tpu.memory_space<vmem>>, vector<1x4x128xbf16>
    %65 = vector.shape_cast %64 : vector<1x4x128xbf16> to vector<4x128xbf16>
    %c0_66 = arith.constant 0 : index
    %c0_67 = arith.constant 0 : index
    %66 = vector.load %arg20[%c0_66, %c0_67] : memref<32x384xbf16, #tpu.memory_space<vmem>>, vector<4x128xbf16>
    tpu.vector_store %arg20[%c0_66, %c0_67], %65 {strides = array<i32>} : memref<32x384xbf16, #tpu.memory_space<vmem>>, vector<4x128xbf16>,
    %c4 = arith.constant 4 : index
    %c0_68 = arith.constant 0 : index
    %67 = vector.load %arg20[%c4, %c0_68] : memref<32x384xbf16, #tpu.memory_space<vmem>>, vector<16x128xbf16>
    tpu.vector_store %arg20[%c4, %c0_68], %58 {strides = array<i32>} : memref<32x384xbf16, #tpu.memory_space<vmem>>, vector<16x128xbf16>,
    %c2_69 = arith.constant 2 : index
    %c2_70 = arith.constant 2 : index
    %c0_71 = arith.constant 0 : index
    %68 = vector.load %arg21[%c2_69, %c2_70, %c0_71] : memref<6x16x128xbf16, #tpu.memory_space<vmem>>, vector<1x2x128xbf16>
    %69 = vector.shape_cast %68 : vector<1x2x128xbf16> to vector<2x128xbf16>
    %c0_72 = arith.constant 0 : index
    %c128_73 = arith.constant 128 : index
    %70 = vector.load %arg20[%c0_72, %c128_73] : memref<32x384xbf16, #tpu.memory_space<vmem>>, vector<2x128xbf16>
    tpu.vector_store %arg20[%c0_72, %c128_73], %69 {strides = array<i32>} : memref<32x384xbf16, #tpu.memory_space<vmem>>, vector<2x128xbf16>,
    %c2_74 = arith.constant 2 : index
    %c128_75 = arith.constant 128 : index
    %71 = vector.load %arg20[%c2_74, %c128_75] : memref<32x384xbf16, #tpu.memory_space<vmem>>, vector<16x128xbf16>
    tpu.vector_store %arg20[%c2_74, %c128_75], %58 {strides = array<i32>} : memref<32x384xbf16, #tpu.memory_space<vmem>>, vector<16x128xbf16>,
    %c0_76 = arith.constant 0 : index
    %c256_77 = arith.constant 256 : index
    %72 = vector.load %arg20[%c0_76, %c256_77] : memref<32x384xbf16, #tpu.memory_space<vmem>>, vector<16x128xbf16>
    tpu.vector_store %arg20[%c0_76, %c256_77], %58 {strides = array<i32>} : memref<32x384xbf16, #tpu.memory_space<vmem>>, vector<16x128xbf16>,
    %73 = vector.extract_strided_slice %58 {offsets = [12, 0], sizes = [4, 128], strides = [1, 1]} : vector<16x128xbf16> to vector<4x128xbf16>
    %c2_78 = arith.constant 2 : index
    %c0_79 = arith.constant 0 : index
    %c0_80 = arith.constant 0 : index
    %74 = vector.load %arg21[%c2_78, %c0_79, %c0_80] : memref<6x16x128xbf16, #tpu.memory_space<vmem>>, vector<1x4x128xbf16>
    %75 = vector.shape_cast %74 : vector<1x4x128xbf16> to vector<4x128xbf16>
    %76 = vector.shape_cast %73 : vector<4x128xbf16> to vector<1x4x128xbf16>
    tpu.vector_store %arg21[%c2_78, %c0_79, %c0_80], %76 {strides = array<i32>} : memref<6x16x128xbf16, #tpu.memory_space<vmem>>, vector<1x4x128xbf16>,
    %c0_81 = arith.constant 0 : index
    %c0_82 = arith.constant 0 : index
    %77 = vector.load %arg20[%c0_81, %c0_82] : memref<32x384xbf16, #tpu.memory_space<vmem>>, vector<16x384xbf16>
    %c0_83 = arith.constant 0 : index
    %c0_84 = arith.constant 0 : index
    %78 = vector.load %arg9[%c0_83, %c0_84] : memref<384x128xbf16, #tpu.memory_space<vmem>>, vector<384x128xbf16>
    %cst_85 = arith.constant dense<0.000000e+00> : vector<16x128xf32>
    %79 = tpu.matmul %77, %78, %cst_85 {dimension_numbers = #tpu.dot_dimension_numbers<[1], [0], [0], [1], [0, 0, 1, 1], [], []>} : vector<16x384xbf16>, vector<384x128xbf16>, vector<16x128xf32> -> vector<16x128xf32>
    %c0_86 = arith.constant 0 : index
    %c0_87 = arith.constant 0 : index
    %80 = vector.load %arg10[%c0_86, %c0_87] : memref<1x128xf32, #tpu.memory_space<vmem>>, vector<1x128xf32>
    %81 = vector.broadcast %80 : vector<1x128xf32> to vector<16x128xf32>
    %82 = arith.addf %79, %81 : vector<16x128xf32>
    %cst_88 = arith.constant 0.000000e+00 : f32
    %83 = vector.broadcast %cst_88 : f32 to vector<16x128xf32>
    %84 = arith.maximumf %82, %83 : vector<16x128xf32>
    %85 = arith.truncf %84 : vector<16x128xf32> to vector<16x128xbf16>
    %c3 = arith.constant 3 : index
    %c0_89 = arith.constant 0 : index
    %c0_90 = arith.constant 0 : index
    %86 = vector.load %arg21[%c3, %c0_89, %c0_90] : memref<6x16x128xbf16, #tpu.memory_space<vmem>>, vector<1x4x128xbf16>
    %87 = vector.shape_cast %86 : vector<1x4x128xbf16> to vector<4x128xbf16>
    %c0_91 = arith.constant 0 : index
    %c0_92 = arith.constant 0 : index
    %88 = vector.load %arg20[%c0_91, %c0_92] : memref<32x384xbf16, #tpu.memory_space<vmem>>, vector<4x128xbf16>
    tpu.vector_store %arg20[%c0_91, %c0_92], %87 {strides = array<i32>} : memref<32x384xbf16, #tpu.memory_space<vmem>>, vector<4x128xbf16>,
    %c4_93 = arith.constant 4 : index
    %c0_94 = arith.constant 0 : index
    %89 = vector.load %arg20[%c4_93, %c0_94] : memref<32x384xbf16, #tpu.memory_space<vmem>>, vector<16x128xbf16>
    tpu.vector_store %arg20[%c4_93, %c0_94], %85 {strides = array<i32>} : memref<32x384xbf16, #tpu.memory_space<vmem>>, vector<16x128xbf16>,
    %c3_95 = arith.constant 3 : index
    %c2_96 = arith.constant 2 : index
    %c0_97 = arith.constant 0 : index
    %90 = vector.load %arg21[%c3_95, %c2_96, %c0_97] : memref<6x16x128xbf16, #tpu.memory_space<vmem>>, vector<1x2x128xbf16>
    %91 = vector.shape_cast %90 : vector<1x2x128xbf16> to vector<2x128xbf16>
    %c0_98 = arith.constant 0 : index
    %c128_99 = arith.constant 128 : index
    %92 = vector.load %arg20[%c0_98, %c128_99] : memref<32x384xbf16, #tpu.memory_space<vmem>>, vector<2x128xbf16>
    tpu.vector_store %arg20[%c0_98, %c128_99], %91 {strides = array<i32>} : memref<32x384xbf16, #tpu.memory_space<vmem>>, vector<2x128xbf16>,
    %c2_100 = arith.constant 2 : index
    %c128_101 = arith.constant 128 : index
    %93 = vector.load %arg20[%c2_100, %c128_101] : memref<32x384xbf16, #tpu.memory_space<vmem>>, vector<16x128xbf16>
    tpu.vector_store %arg20[%c2_100, %c128_101], %85 {strides = array<i32>} : memref<32x384xbf16, #tpu.memory_space<vmem>>, vector<16x128xbf16>,
    %c0_102 = arith.constant 0 : index
    %c256_103 = arith.constant 256 : index
    %94 = vector.load %arg20[%c0_102, %c256_103] : memref<32x384xbf16, #tpu.memory_space<vmem>>, vector<16x128xbf16>
    tpu.vector_store %arg20[%c0_102, %c256_103], %85 {strides = array<i32>} : memref<32x384xbf16, #tpu.memory_space<vmem>>, vector<16x128xbf16>,
    %95 = vector.extract_strided_slice %85 {offsets = [12, 0], sizes = [4, 128], strides = [1, 1]} : vector<16x128xbf16> to vector<4x128xbf16>
    %c3_104 = arith.constant 3 : index
    %c0_105 = arith.constant 0 : index
    %c0_106 = arith.constant 0 : index
    %96 = vector.load %arg21[%c3_104, %c0_105, %c0_106] : memref<6x16x128xbf16, #tpu.memory_space<vmem>>, vector<1x4x128xbf16>
    %97 = vector.shape_cast %96 : vector<1x4x128xbf16> to vector<4x128xbf16>
    %98 = vector.shape_cast %95 : vector<4x128xbf16> to vector<1x4x128xbf16>
    tpu.vector_store %arg21[%c3_104, %c0_105, %c0_106], %98 {strides = array<i32>} : memref<6x16x128xbf16, #tpu.memory_space<vmem>>, vector<1x4x128xbf16>,
    %c0_107 = arith.constant 0 : index
    %c0_108 = arith.constant 0 : index
    %99 = vector.load %arg20[%c0_107, %c0_108] : memref<32x384xbf16, #tpu.memory_space<vmem>>, vector<16x384xbf16>
    %c0_109 = arith.constant 0 : index
    %c0_110 = arith.constant 0 : index
    %100 = vector.load %arg11[%c0_109, %c0_110] : memref<384x128xbf16, #tpu.memory_space<vmem>>, vector<384x128xbf16>
    %cst_111 = arith.constant dense<0.000000e+00> : vector<16x128xf32>
    %101 = tpu.matmul %99, %100, %cst_111 {dimension_numbers = #tpu.dot_dimension_numbers<[1], [0], [0], [1], [0, 0, 1, 1], [], []>} : vector<16x384xbf16>, vector<384x128xbf16>, vector<16x128xf32> -> vector<16x128xf32>
    %c0_112 = arith.constant 0 : index
    %c0_113 = arith.constant 0 : index
    %102 = vector.load %arg12[%c0_112, %c0_113] : memref<1x128xf32, #tpu.memory_space<vmem>>, vector<1x128xf32>
    %103 = vector.broadcast %102 : vector<1x128xf32> to vector<16x128xf32>
    %104 = arith.addf %101, %103 : vector<16x128xf32>
    %cst_114 = arith.constant 0.000000e+00 : f32
    %105 = vector.broadcast %cst_114 : f32 to vector<16x128xf32>
    %106 = arith.maximumf %104, %105 : vector<16x128xf32>
    %107 = arith.addf %106, %63 : vector<16x128xf32>
    %cst_115 = arith.constant 0.000000e+00 : f32
    %108 = vector.broadcast %cst_115 : f32 to vector<16x128xf32>
    %109 = arith.maximumf %107, %108 : vector<16x128xf32>
    %110 = arith.truncf %109 : vector<16x128xf32> to vector<16x128xbf16>
    %c4_116 = arith.constant 4 : index
    %c0_117 = arith.constant 0 : index
    %c0_118 = arith.constant 0 : index
    %111 = vector.load %arg21[%c4_116, %c0_117, %c0_118] : memref<6x16x128xbf16, #tpu.memory_space<vmem>>, vector<1x8x128xbf16>
    %112 = vector.shape_cast %111 : vector<1x8x128xbf16> to vector<8x128xbf16>
    %c0_119 = arith.constant 0 : index
    %c0_120 = arith.constant 0 : index
    %113 = vector.load %arg20[%c0_119, %c0_120] : memref<32x384xbf16, #tpu.memory_space<vmem>>, vector<8x128xbf16>
    tpu.vector_store %arg20[%c0_119, %c0_120], %112 {strides = array<i32>} : memref<32x384xbf16, #tpu.memory_space<vmem>>, vector<8x128xbf16>,
    %c8 = arith.constant 8 : index
    %c0_121 = arith.constant 0 : index
    %114 = vector.load %arg20[%c8, %c0_121] : memref<32x384xbf16, #tpu.memory_space<vmem>>, vector<16x128xbf16>
    tpu.vector_store %arg20[%c8, %c0_121], %110 {strides = array<i32>} : memref<32x384xbf16, #tpu.memory_space<vmem>>, vector<16x128xbf16>,
    %c4_122 = arith.constant 4 : index
    %c4_123 = arith.constant 4 : index
    %c0_124 = arith.constant 0 : index
    %115 = vector.load %arg21[%c4_122, %c4_123, %c0_124] : memref<6x16x128xbf16, #tpu.memory_space<vmem>>, vector<1x4x128xbf16>
    %116 = vector.shape_cast %115 : vector<1x4x128xbf16> to vector<4x128xbf16>
    %c0_125 = arith.constant 0 : index
    %c128_126 = arith.constant 128 : index
    %117 = vector.load %arg20[%c0_125, %c128_126] : memref<32x384xbf16, #tpu.memory_space<vmem>>, vector<4x128xbf16>
    tpu.vector_store %arg20[%c0_125, %c128_126], %116 {strides = array<i32>} : memref<32x384xbf16, #tpu.memory_space<vmem>>, vector<4x128xbf16>,
    %c4_127 = arith.constant 4 : index
    %c128_128 = arith.constant 128 : index
    %118 = vector.load %arg20[%c4_127, %c128_128] : memref<32x384xbf16, #tpu.memory_space<vmem>>, vector<16x128xbf16>
    tpu.vector_store %arg20[%c4_127, %c128_128], %110 {strides = array<i32>} : memref<32x384xbf16, #tpu.memory_space<vmem>>, vector<16x128xbf16>,
    %c0_129 = arith.constant 0 : index
    %c256_130 = arith.constant 256 : index
    %119 = vector.load %arg20[%c0_129, %c256_130] : memref<32x384xbf16, #tpu.memory_space<vmem>>, vector<16x128xbf16>
    tpu.vector_store %arg20[%c0_129, %c256_130], %110 {strides = array<i32>} : memref<32x384xbf16, #tpu.memory_space<vmem>>, vector<16x128xbf16>,
    %120 = vector.extract_strided_slice %110 {offsets = [8, 0], sizes = [8, 128], strides = [1, 1]} : vector<16x128xbf16> to vector<8x128xbf16>
    %c4_131 = arith.constant 4 : index
    %c0_132 = arith.constant 0 : index
    %c0_133 = arith.constant 0 : index
    %121 = vector.load %arg21[%c4_131, %c0_132, %c0_133] : memref<6x16x128xbf16, #tpu.memory_space<vmem>>, vector<1x8x128xbf16>
    %122 = vector.shape_cast %121 : vector<1x8x128xbf16> to vector<8x128xbf16>
    %123 = vector.shape_cast %120 : vector<8x128xbf16> to vector<1x8x128xbf16>
    tpu.vector_store %arg21[%c4_131, %c0_132, %c0_133], %123 {strides = array<i32>} : memref<6x16x128xbf16, #tpu.memory_space<vmem>>, vector<1x8x128xbf16>,
    %c0_134 = arith.constant 0 : index
    %c0_135 = arith.constant 0 : index
    %124 = vector.load %arg20[%c0_134, %c0_135] : memref<32x384xbf16, #tpu.memory_space<vmem>>, vector<16x384xbf16>
    %c0_136 = arith.constant 0 : index
    %c0_137 = arith.constant 0 : index
    %125 = vector.load %arg15[%c0_136, %c0_137] : memref<384x128xbf16, #tpu.memory_space<vmem>>, vector<384x128xbf16>
    %cst_138 = arith.constant dense<0.000000e+00> : vector<16x128xf32>
    %126 = tpu.matmul %124, %125, %cst_138 {dimension_numbers = #tpu.dot_dimension_numbers<[1], [0], [0], [1], [0, 0, 1, 1], [], []>} : vector<16x384xbf16>, vector<384x128xbf16>, vector<16x128xf32> -> vector<16x128xf32>
    %c0_139 = arith.constant 0 : index
    %c0_140 = arith.constant 0 : index
    %127 = vector.load %arg16[%c0_139, %c0_140] : memref<1x128xf32, #tpu.memory_space<vmem>>, vector<1x128xf32>
    %128 = vector.broadcast %127 : vector<1x128xf32> to vector<16x128xf32>
    %129 = arith.addf %126, %128 : vector<16x128xf32>
    %cst_141 = arith.constant 0.000000e+00 : f32
    %130 = vector.broadcast %cst_141 : f32 to vector<16x128xf32>
    %131 = arith.maximumf %129, %130 : vector<16x128xf32>
    %132 = arith.truncf %131 : vector<16x128xf32> to vector<16x128xbf16>
    %c5 = arith.constant 5 : index
    %c0_142 = arith.constant 0 : index
    %c0_143 = arith.constant 0 : index
    %133 = vector.load %arg21[%c5, %c0_142, %c0_143] : memref<6x16x128xbf16, #tpu.memory_space<vmem>>, vector<1x8x128xbf16>
    %134 = vector.shape_cast %133 : vector<1x8x128xbf16> to vector<8x128xbf16>
    %c0_144 = arith.constant 0 : index
    %c0_145 = arith.constant 0 : index
    %135 = vector.load %arg20[%c0_144, %c0_145] : memref<32x384xbf16, #tpu.memory_space<vmem>>, vector<8x128xbf16>
    tpu.vector_store %arg20[%c0_144, %c0_145], %134 {strides = array<i32>} : memref<32x384xbf16, #tpu.memory_space<vmem>>, vector<8x128xbf16>,
    %c8_146 = arith.constant 8 : index
    %c0_147 = arith.constant 0 : index
    %136 = vector.load %arg20[%c8_146, %c0_147] : memref<32x384xbf16, #tpu.memory_space<vmem>>, vector<16x128xbf16>
    tpu.vector_store %arg20[%c8_146, %c0_147], %132 {strides = array<i32>} : memref<32x384xbf16, #tpu.memory_space<vmem>>, vector<16x128xbf16>,
    %c5_148 = arith.constant 5 : index
    %c4_149 = arith.constant 4 : index
    %c0_150 = arith.constant 0 : index
    %137 = vector.load %arg21[%c5_148, %c4_149, %c0_150] : memref<6x16x128xbf16, #tpu.memory_space<vmem>>, vector<1x4x128xbf16>
    %138 = vector.shape_cast %137 : vector<1x4x128xbf16> to vector<4x128xbf16>
    %c0_151 = arith.constant 0 : index
    %c128_152 = arith.constant 128 : index
    %139 = vector.load %arg20[%c0_151, %c128_152] : memref<32x384xbf16, #tpu.memory_space<vmem>>, vector<4x128xbf16>
    tpu.vector_store %arg20[%c0_151, %c128_152], %138 {strides = array<i32>} : memref<32x384xbf16, #tpu.memory_space<vmem>>, vector<4x128xbf16>,
    %c4_153 = arith.constant 4 : index
    %c128_154 = arith.constant 128 : index
    %140 = vector.load %arg20[%c4_153, %c128_154] : memref<32x384xbf16, #tpu.memory_space<vmem>>, vector<16x128xbf16>
    tpu.vector_store %arg20[%c4_153, %c128_154], %132 {strides = array<i32>} : memref<32x384xbf16, #tpu.memory_space<vmem>>, vector<16x128xbf16>,
    %c0_155 = arith.constant 0 : index
    %c256_156 = arith.constant 256 : index
    %141 = vector.load %arg20[%c0_155, %c256_156] : memref<32x384xbf16, #tpu.memory_space<vmem>>, vector<16x128xbf16>
    tpu.vector_store %arg20[%c0_155, %c256_156], %132 {strides = array<i32>} : memref<32x384xbf16, #tpu.memory_space<vmem>>, vector<16x128xbf16>,
    %142 = vector.extract_strided_slice %132 {offsets = [8, 0], sizes = [8, 128], strides = [1, 1]} : vector<16x128xbf16> to vector<8x128xbf16>
    %c5_157 = arith.constant 5 : index
    %c0_158 = arith.constant 0 : index
    %c0_159 = arith.constant 0 : index
    %143 = vector.load %arg21[%c5_157, %c0_158, %c0_159] : memref<6x16x128xbf16, #tpu.memory_space<vmem>>, vector<1x8x128xbf16>
    %144 = vector.shape_cast %143 : vector<1x8x128xbf16> to vector<8x128xbf16>
    %145 = vector.shape_cast %142 : vector<8x128xbf16> to vector<1x8x128xbf16>
    tpu.vector_store %arg21[%c5_157, %c0_158, %c0_159], %145 {strides = array<i32>} : memref<6x16x128xbf16, #tpu.memory_space<vmem>>, vector<1x8x128xbf16>,
    %c0_160 = arith.constant 0 : index
    %c0_161 = arith.constant 0 : index
    %146 = vector.load %arg20[%c0_160, %c0_161] : memref<32x384xbf16, #tpu.memory_space<vmem>>, vector<16x384xbf16>
    %c0_162 = arith.constant 0 : index
    %c0_163 = arith.constant 0 : index
    %147 = vector.load %arg17[%c0_162, %c0_163] : memref<384x128xbf16, #tpu.memory_space<vmem>>, vector<384x128xbf16>
    %cst_164 = arith.constant dense<0.000000e+00> : vector<16x128xf32>
    %148 = tpu.matmul %146, %147, %cst_164 {dimension_numbers = #tpu.dot_dimension_numbers<[1], [0], [0], [1], [0, 0, 1, 1], [], []>} : vector<16x384xbf16>, vector<384x128xbf16>, vector<16x128xf32> -> vector<16x128xf32>
    %c0_165 = arith.constant 0 : index
    %c0_166 = arith.constant 0 : index
    %149 = vector.load %arg18[%c0_165, %c0_166] : memref<1x128xf32, #tpu.memory_space<vmem>>, vector<1x128xf32>
    %150 = vector.broadcast %149 : vector<1x128xf32> to vector<16x128xf32>
    %151 = arith.addf %148, %150 : vector<16x128xf32>
    %cst_167 = arith.constant 0.000000e+00 : f32
    %152 = vector.broadcast %cst_167 : f32 to vector<16x128xf32>
    %153 = arith.maximumf %151, %152 : vector<16x128xf32>
    %154 = arith.addf %153, %109 : vector<16x128xf32>
    %cst_168 = arith.constant 0.000000e+00 : f32
    %155 = vector.broadcast %cst_168 : f32 to vector<16x128xf32>
    %156 = arith.maximumf %154, %155 : vector<16x128xf32>
    %c0_169 = arith.constant 0 : index
    %c0_170 = arith.constant 0 : index
    %c0_171 = arith.constant 0 : index
    %157 = vector.load %arg19[%c0_169, %c0_170, %c0_171] : memref<1x16x128xf32, #tpu.memory_space<vmem>>, vector<1x16x128xf32>
    %158 = vector.shape_cast %157 : vector<1x16x128xf32> to vector<16x128xf32>
    %159 = vector.shape_cast %156 : vector<16x128xf32> to vector<1x16x128xf32>
    tpu.vector_store %arg19[%c0_169, %c0_170, %c0_171], %159 {strides = array<i32>} : memref<1x16x128xf32, #tpu.memory_space<vmem>>, vector<1x16x128xf32>,
    return
  }
  func.func @transform_0(%arg0: i32, %arg1: i32) -> (i32, i32, i32) {
    %c0_i32 = arith.constant 0 : i32
    %c0_i32_0 = arith.constant 0 : i32
    return %arg0, %arg1, %c0_i32 : i32, i32, i32
  }
  func.func @transform_1(%arg0: i32, %arg1: i32) -> (i32, i32) {
    %c0_i32 = arith.constant 0 : i32
    %c0_i32_0 = arith.constant 0 : i32
    %c0_i32_1 = arith.constant 0 : i32
    return %c0_i32, %c0_i32_0 : i32, i32
  }
  func.func @transform_2(%arg0: i32, %arg1: i32) -> (i32, i32) {
    %c0_i32 = arith.constant 0 : i32
    %c0_i32_0 = arith.constant 0 : i32
    %c0_i32_1 = arith.constant 0 : i32
    return %c0_i32, %c0_i32_0 : i32, i32
  }
  func.func @transform_3(%arg0: i32, %arg1: i32) -> (i32, i32) {
    %c0_i32 = arith.constant 0 : i32
    %c0_i32_0 = arith.constant 0 : i32
    %c0_i32_1 = arith.constant 0 : i32
    return %c0_i32, %c0_i32_0 : i32, i32
  }
  func.func @transform_4(%arg0: i32, %arg1: i32) -> (i32, i32) {
    %c0_i32 = arith.constant 0 : i32
    %c0_i32_0 = arith.constant 0 : i32
    %c0_i32_1 = arith.constant 0 : i32
    return %c0_i32, %c0_i32_0 : i32, i32
  }
  func.func @transform_5(%arg0: i32, %arg1: i32) -> (i32, i32) {
    %c0_i32 = arith.constant 0 : i32
    %c0_i32_0 = arith.constant 0 : i32
    %c0_i32_1 = arith.constant 0 : i32
    return %c0_i32, %c0_i32_0 : i32, i32
  }
  func.func @transform_6(%arg0: i32, %arg1: i32) -> (i32, i32) {
    %c0_i32 = arith.constant 0 : i32
    %c0_i32_0 = arith.constant 0 : i32
    %c0_i32_1 = arith.constant 0 : i32
    return %c0_i32, %c0_i32_0 : i32, i32
  }
  func.func @transform_7(%arg0: i32, %arg1: i32) -> (i32, i32) {
    %c0_i32 = arith.constant 0 : i32
    %c0_i32_0 = arith.constant 0 : i32
    %c0_i32_1 = arith.constant 0 : i32
    return %c0_i32, %c0_i32_0 : i32, i32
  }
  func.func @transform_8(%arg0: i32, %arg1: i32) -> (i32, i32) {
    %c0_i32 = arith.constant 0 : i32
    %c0_i32_0 = arith.constant 0 : i32
    %c0_i32_1 = arith.constant 0 : i32
    return %c0_i32, %c0_i32_0 : i32, i32
  }
  func.func @transform_9(%arg0: i32, %arg1: i32) -> (i32, i32) {
    %c0_i32 = arith.constant 0 : i32
    %c0_i32_0 = arith.constant 0 : i32
    %c0_i32_1 = arith.constant 0 : i32
    return %c0_i32, %c0_i32_0 : i32, i32
  }
  func.func @transform_10(%arg0: i32, %arg1: i32) -> (i32, i32) {
    %c0_i32 = arith.constant 0 : i32
    %c0_i32_0 = arith.constant 0 : i32
    %c0_i32_1 = arith.constant 0 : i32
    return %c0_i32, %c0_i32_0 : i32, i32
  }
  func.func @transform_11(%arg0: i32, %arg1: i32) -> (i32, i32) {
    %c0_i32 = arith.constant 0 : i32
    %c0_i32_0 = arith.constant 0 : i32
    %c0_i32_1 = arith.constant 0 : i32
    return %c0_i32, %c0_i32_0 : i32, i32
  }
  func.func @transform_12(%arg0: i32, %arg1: i32) -> (i32, i32) {
    %c0_i32 = arith.constant 0 : i32
    %c0_i32_0 = arith.constant 0 : i32
    %c0_i32_1 = arith.constant 0 : i32
    return %c0_i32, %c0_i32_0 : i32, i32
  }
  func.func @transform_13(%arg0: i32, %arg1: i32) -> (i32, i32) {
    %c0_i32 = arith.constant 0 : i32
    %c0_i32_0 = arith.constant 0 : i32
    %c0_i32_1 = arith.constant 0 : i32
    return %c0_i32, %c0_i32_0 : i32, i32
  }
  func.func @transform_14(%arg0: i32, %arg1: i32) -> (i32, i32) {
    %c0_i32 = arith.constant 0 : i32
    %c0_i32_0 = arith.constant 0 : i32
    %c0_i32_1 = arith.constant 0 : i32
    return %c0_i32, %c0_i32_0 : i32, i32
  }
  func.func @transform_15(%arg0: i32, %arg1: i32) -> (i32, i32) {
    %c0_i32 = arith.constant 0 : i32
    %c0_i32_0 = arith.constant 0 : i32
    %c0_i32_1 = arith.constant 0 : i32
    return %c0_i32, %c0_i32_0 : i32, i32
  }
  func.func @transform_16(%arg0: i32, %arg1: i32) -> (i32, i32) {
    %c0_i32 = arith.constant 0 : i32
    %c0_i32_0 = arith.constant 0 : i32
    %c0_i32_1 = arith.constant 0 : i32
    return %c0_i32, %c0_i32_0 : i32, i32
  }
  func.func @transform_17(%arg0: i32, %arg1: i32) -> (i32, i32, i32) {
    %c0_i32 = arith.constant 0 : i32
    %c0_i32_0 = arith.constant 0 : i32
    return %arg0, %arg1, %c0_i32 : i32, i32, i32
  }
}

</mosaic_0001>

<bundles_post_ra>
// kernel: tpu_custom_call.1
= control target key start
LH: loop header
LB: loop body
LE: loop exit
PB: predicated region body
PF: predicated region fallthrough
CT: control target
= control target key end

     0   :  { %s4983_s0 = inlined_call_operand.hbm [shape: bf16[2,48,128], index: 0, kind: input, shape index: {}]   ;;  %s4984_s1 = inlined_call_operand.hbm [shape: bf16[384,128], index: 1, kind: input, shape index: {}]   ;;  %s4985_s2 = inlined_call_operand.vmem [shape: f32[1,128], index: 2, kind: input, shape index: {}]   ;;  %s4986_s3 = inlined_call_operand.hbm [shape: bf16[384,128], index: 3, kind: input, shape index: {}]   ;;  %s4987_s4 = inlined_call_operand.vmem [shape: f32[1,128], index: 4, kind: input, shape index: {}]   ;;  %s4988_s5 = inlined_call_operand.hbm [shape: bf16[128,128], index: 5, kind: input, shape index: {}]   ;;  %s4989_s6 = inlined_call_operand.vmem [shape: f32[1,128], index: 6, kind: input, shape index: {}]   ;;  %s4990_s7 = inlined_call_operand.hbm [shape: bf16[384,128], index: 7, kind: input, shape index: {}]   ;;  %s4991_s8 = inlined_call_operand.vmem [shape: f32[1,128], index: 8, kind: input, shape index: {}]   ;;  %s4992_s9 = inlined_call_operand.hbm [shape: bf16[384,128], index: 9, kind: input, shape index: {}]   ;;  %s4993_s10 = inlined_call_operand.vmem [shape: f32[1,128], index: 10, kind: input, shape index: {}]   ;;  %s4994_s11 = inlined_call_operand.hbm [shape: bf16[128,128], index: 11, kind: input, shape index: {}]   ;;  %s4995_s12 = inlined_call_operand.vmem [shape: f32[1,128], index: 12, kind: input, shape index: {}]   ;;  %s4996_s13 = inlined_call_operand.hbm [shape: bf16[384,128], index: 13, kind: input, shape index: {}]   ;;  %s4997_s14 = inlined_call_operand.vmem [shape: f32[1,128], index: 14, kind: input, shape index: {}]   ;;  %s4998_s15 = inlined_call_operand.hbm [shape: bf16[384,128], index: 15, kind: input, shape index: {}]   ;;  %s4999_s16 = inlined_call_operand.vmem [shape: f32[1,128], index: 16, kind: input, shape index: {}]   ;;  %s5000_s17 = inlined_call_operand.hbm [shape: f32[2,48,128], index: 17, kind: output, shape index: {}]  }
   0x1   :  { %5012 = sst [smem:[#allocation29_spill]] %s4983_s0 }
   0x2   :  { %5013 = sst [smem:[#allocation30_spill]] %s4984_s1 }
   0x3   :  { %5014 = sst [smem:[#allocation31_spill]] %s4985_s2 }
   0x4   :  { %5015 = sst [smem:[#allocation32_spill]] %s4986_s3 }
   0x5   :  { %5016 = sst [smem:[#allocation33_spill]] %s4987_s4 }
   0x6   :  { %5017 = sst [smem:[#allocation34_spill]] %s4988_s5 }
   0x7   :  { %5018 = sst [smem:[#allocation35_spill]] %s4989_s6 }
   0x8   :  { %5019 = sst [smem:[#allocation36_spill]] %s4990_s7 }
   0x9   :  { %5020 = sst [smem:[#allocation37_spill]] %s4991_s8 }
   0xa   :  { %5021 = sst [smem:[#allocation38_spill]] %s4992_s9 }
   0xb   :  { %5022 = sst [smem:[#allocation39_spill]] %s4993_s10 }
   0xc   :  { %5023 = sst [smem:[#allocation40_spill]] %s4995_s12 }
   0xd   :  { %5024 = sst [smem:[#allocation41_spill]] %s4997_s14 }
   0xe   :  { %5025 = sst [smem:[#allocation42_spill]] %s4999_s16 }
   0xf   :  { %5026 = sst [smem:[#allocation43_spill]] %s5000_s17 }
  0x10   :  { %22 = vsyncpa [#allocation5], 0 }
  0x11   :  { %24 = vsyncpa [#allocation5 + $0x1], 0 }
  0x12   :  { %25 = vsyncpa [#allocation8], 0 }
  0x13   :  { %26 = vsyncpa [#allocation11], 0 }
  0x14   :  { %27 = vsyncpa [#allocation14], 0 }
  0x15   :  { %28 = vsyncpa [#allocation17], 0 }
  0x16   :  { %29 = vsyncpa [#allocation6], 0 }
  0x17   :  { %31 = vsyncpa [#allocation6 + $0x1], 0  ;;  %s4385_s24 = smov 0   ;;  %s4387_s25 = smov 0  }
  0x18   :  { %s4389_s26 = smov 0   ;;  %s4391_s27 = smov 0  }
  0x19   :  { %s4393_s28 = smov 0   ;;  %s4395_s29 = smov 0  }
  0x1a   :  { %s4397_s0 = smov 0   ;;  %s4399_s30 = smov 0  }
  0x1b LB: > { %5027 = sst [smem:[#allocation26_spill]] %s4260_s27  ;;  %s5003_s18 = sadd.s32 4294967295, %s4276_s30   ;;  %s4276_s30 = sphi %s4399_s30, %s37_s30   ;;  %s4272_s0 = sphi %s4397_s0, %s5077_s0   ;;  %s4268_s29 = sphi %s4395_s29, %s5076_s29   ;;  %s4264_s28 = sphi %s4393_s28, %s5075_s28   ;;  %s4260_s27 = sphi %s4391_s27, %s5074_s27   ;;  %s4256_s26 = sphi %s4389_s26, %s5073_s26   ;;  %s4252_s25 = sphi %s4387_s25, %s5072_s25   ;;  %s4248_s24 = sphi %s4385_s24, %s5071_s24  }
  0x1c   : > { %5028 = sst [smem:[#allocation27_spill]] %s4264_s28  ;;  %p3014_p0 = scmp.ge.s32.totalorder %s4276_s30, 1 }
  0x1d   : > { %p4429_p1 = scmp.eq.s32.totalorder %s5003_s18, 0  ;;  %p446_p2 = scmp.lt.s32.totalorder %s4276_s30, 7 }
  0x1e   : > { %s4278_s20 = smov [#allocation7]   ;;  %s4279_s23 = smov [#allocation10]  }
  0x1f   : > { %s5029_s19 = scalar_select %p4429_p1, 1, 0 }
  0x20   : > { %p4434_p3 = pnand %p3014_p0, %p446_p2  ;;  %s458_s21 = sshll.u32 %s4278_s20, 4  ;;  %s4438_s21 = int_to_ptr.vmem [resolvable:$true] %s458_s21 }
  0x21   : > { %s490_s18 = sshll.u32 %s4279_s23, 4  ;;  %s4280_s17 = smov [#allocation13]   ;;  %s4448_s18 = int_to_ptr.vmem [resolvable:$true] %s490_s18 }
  0x22   : > { %s5030_s1 = scalar_select %p4434_p3, 1, 0 }
  0x23   : > { %p3616_p4 = pneg %p4434_p3  ;;  %s4450_s16 = sshll.u32 %s4280_s17, 4  ;;  %s523_s16 = int_to_ptr.vmem [resolvable:$true] %s4450_s16 }
  0x24   : > { %5031 = sst [smem:[#allocation28_spill]] %s5030_s1 }
  0x25   : > { %p4444_p5 = pnand %p3616_p4, %p4429_p1  ;;  %s5033_s20 = sld [smem:[#allocation30_spill]] }
  0x27   : > { %p4460_p7 = pneg %p4444_p5 }
  0x2b   : > { %s3908_s12 = scalar_lea.hbm %s5033_s20, 3072 }
  0x2c   : > { %p3909_p6 = scmp.ne.s32.totalorder %s5033_s20, %s3908_s12  ;;  %p3915_p10 = scmp.lt.u32.totalorder %s3908_s12, %s5033_s20 }
  0x2e   : > { %p3911_p8 = pnand %p4460_p7, %p3909_p6 }
  0x30   : > { %p3912_p9 = pneg %p3911_p8 }
  0x32   : > { %p3917_p11 = pnand %p3915_p10, %p3912_p9 }
  0x34   : > { %3920 = shalt.err (!%p3917_p11)
}
  0x35   : > { %s3921_s8 = scalar_lea.vmem %s4438_s21, 3072  ;;  %p3929_p2 = scmp.lt.s32.totalorder %s4438_s21, %s4438_s21 }
  0x36   : > { %p3922_p12 = scmp.ne.s32.totalorder %s4438_s21, %s3921_s8  ;;  %p3930_p4 = scmp.lt.s32.totalorder %s3921_s8, %s3921_s8 }
  0x38   : > { %p3924_p13 = pnand %p3922_p12, %p4460_p7  ;;  %p3931_p6 = por %p3930_p4, %p3929_p2 }
  0x3a   : > { %p3925_p0 = pneg %p3924_p13 }
  0x3c   : > { %p3932_p8 = pnand %p3931_p6, %p3925_p0 }
  0x3e   : > { %3935 = shalt.err (!%p3932_p8)
}
  0x3f   : > { %s5009_s10 = smov 64   ;;  %s5010_s12 = smov 4  }
  0x40   : > { %3619 = dma.hbm_to_vmem [thread:$0]  (!%p4444_p5), %s5033_s20, 3072, %s4438_s21, [#allocation8], %s5009_s10, %s5009_s10, %s5010_s12  }
  0x41   : > { %s5035_s5 = sld [smem:[#allocation34_spill]] }
  0x47   : > { %s3936_s8 = scalar_lea.hbm %s5035_s5, 1024 }
  0x48   : > { %p3937_p9 = scmp.ne.s32.totalorder %s5035_s5, %s3936_s8  ;;  %p3943_p12 = scmp.lt.u32.totalorder %s3936_s8, %s5035_s5 }
  0x4a   : > { %p3939_p10 = pnand %p3937_p9, %p4460_p7 }
  0x4c   : > { %p3940_p11 = pneg %p3939_p10 }
  0x4e   : > { %p3945_p13 = pnand %p3943_p12, %p3940_p11 }
  0x50   : > { %3948 = shalt.err (!%p3945_p13)
}
  0x51   : > { %s3949_s21 = scalar_lea.vmem %s4448_s18, 1024  ;;  %p3957_p6 = scmp.lt.s32.totalorder %s4448_s18, %s4448_s18 }
  0x52   : > { %p3950_p0 = scmp.ne.s32.totalorder %s4448_s18, %s3949_s21  ;;  %p3958_p8 = scmp.lt.s32.totalorder %s3949_s21, %s3949_s21 }
  0x54   : > { %p3952_p2 = pnand %p3950_p0, %p4460_p7  ;;  %p3959_p9 = por %p3958_p8, %p3957_p6 }
  0x56   : > { %p3953_p4 = pneg %p3952_p2 }
  0x58   : > { %p3960_p10 = pnand %p3959_p9, %p3953_p4 }
  0x5a   : > { %3963 = shalt.err (!%p3960_p10)
}
  0x5b   : > { %3625 = dma.hbm_to_vmem [thread:$0]  (!%p4444_p5), %s5035_s5, 1024, %s4448_s18, [#allocation11], %s5009_s10, %s5009_s10, %s5010_s12  }
  0x5c   : > { %s5036_s9 = sld [smem:[#allocation38_spill]] }
  0x62   : > { %s3964_s14 = scalar_lea.hbm %s5036_s9, 3072 }
  0x63   : > { %p3965_p11 = scmp.ne.s32.totalorder %s5036_s9, %s3964_s14  ;;  %p3971_p0 = scmp.lt.u32.totalorder %s3964_s14, %s5036_s9 }
  0x65   : > { %p3967_p12 = pnand %p3965_p11, %p4460_p7 }
  0x67   : > { %p3968_p13 = pneg %p3967_p12 }
  0x69   : > { %p3973_p2 = pnand %p3971_p0, %p3968_p13 }
  0x6b   : > { %3976 = shalt.err (!%p3973_p2)
}
  0x6c   : > { %s3977_s21 = scalar_lea.vmem %s523_s16, 3072  ;;  %p3985_p9 = scmp.lt.s32.totalorder %s523_s16, %s523_s16 }
  0x6d   : > { %p3978_p4 = scmp.ne.s32.totalorder %s523_s16, %s3977_s21  ;;  %p3986_p10 = scmp.lt.s32.totalorder %s3977_s21, %s3977_s21 }
  0x6f   : > { %p3980_p6 = pnand %p3978_p4, %p4460_p7  ;;  %p3987_p3 = por %p3986_p10, %p3985_p9 }
  0x71   : > { %p3981_p8 = pneg %p3980_p6 }
  0x73   : > { %p3988_p1 = pnand %p3987_p3, %p3981_p8 }
  0x75   : > { %3991 = shalt.err (!%p3988_p1)
}
  0x76   : > { %3631 = dma.hbm_to_vmem [thread:$0]  (!%p4444_p5), %s5036_s9, 3072, %s523_s16, [#allocation14], %s5009_s10, %s5009_s10, %s5010_s12  }
  0x77   : > { %s4283_s4 = smov [#allocation16]   ;;  %s4284_s1 = smov [#allocation9]  }
  0x78   : > { %s554_s27 = sshll.u32 %s4283_s4, 4  ;;  %s474_s14 = sshll.u32 %s4284_s1, 4  ;;  %s555_s27 = int_to_ptr.vmem [resolvable:$true] %s554_s27  ;;  %s475_s14 = int_to_ptr.vmem [resolvable:$true] %s474_s14 }
  0x79   : > { %s3992_s17 = scalar_lea.hbm %s4996_s13, 3072 }
  0x7a   : > { %p3993_p1 = scmp.ne.s32.totalorder %s4996_s13, %s3992_s17  ;;  %p3999_p12 = scmp.lt.u32.totalorder %s3992_s17, %s4996_s13 }
  0x7c   : > { %p3995_p3 = pnand %p3993_p1, %p4460_p7 }
  0x7e   : > { %p3996_p11 = pneg %p3995_p3 }
  0x80   : > { %p4001_p13 = pnand %p3999_p12, %p3996_p11 }
  0x82   : > { %4004 = shalt.err (!%p4001_p13)
}
  0x83   : > { %s4005_s16 = scalar_lea.vmem %s555_s27, 3072  ;;  %p4013_p6 = scmp.lt.s32.totalorder %s555_s27, %s555_s27 }
  0x84   : > { %p4006_p0 = scmp.ne.s32.totalorder %s555_s27, %s4005_s16  ;;  %p4014_p8 = scmp.lt.s32.totalorder %s4005_s16, %s4005_s16 }
  0x86   : > { %p4008_p2 = pnand %p4006_p0, %p4460_p7  ;;  %p4015_p9 = por %p4014_p8, %p4013_p6 }
  0x88   : > { %p4009_p4 = pneg %p4008_p2 }
  0x8a   : > { %p4016_p10 = pnand %p4015_p9, %p4009_p4 }
  0x8c   : > { %4019 = shalt.err (!%p4016_p10)
}
  0x8d   : > { %3637 = dma.hbm_to_vmem [thread:$0]  (!%p4444_p5), %s4996_s13, 3072, %s555_s27, [#allocation17], %s5009_s10, %s5009_s10, %s5010_s12  }
  0x8e   : > { %s5037_s3 = sld [smem:[#allocation32_spill]] }
  0x94   : > { %s4020_s28 = scalar_lea.hbm %s5037_s3, 3072 }
  0x95   : > { %p4021_p1 = scmp.ne.s32.totalorder %s5037_s3, %s4020_s28  ;;  %p4027_p12 = scmp.lt.u32.totalorder %s4020_s28, %s5037_s3 }
  0x97   : > { %p4023_p3 = pnand %p4021_p1, %p4460_p7 }
  0x99   : > { %p4024_p11 = pneg %p4023_p3 }
  0x9b   : > { %p4029_p13 = pnand %p4027_p12, %p4024_p11 }
  0x9d   : > { %4032 = shalt.err (!%p4029_p13)
}
  0x9e   : > { %s4033_s18 = scalar_lea.vmem %s475_s14, 3072  ;;  %p4041_p6 = scmp.lt.s32.totalorder %s475_s14, %s475_s14 }
  0x9f   : > { %p4034_p0 = scmp.ne.s32.totalorder %s475_s14, %s4033_s18  ;;  %p4042_p8 = scmp.lt.s32.totalorder %s4033_s18, %s4033_s18 }
  0xa1   : > { %p4036_p2 = pnand %p4034_p0, %p4460_p7  ;;  %p4043_p9 = por %p4042_p8, %p4041_p6 }
  0xa3   : > { %p4037_p4 = pneg %p4036_p2 }
  0xa5   : > { %p4044_p10 = pnand %p4043_p9, %p4037_p4 }
  0xa7   : > { %4047 = shalt.err (!%p4044_p10)
}
  0xa8   : > { %3622 = dma.hbm_to_vmem [thread:$0]  (!%p4444_p5), %s5037_s3, 3072, %s475_s14, [#allocation8], %s5009_s10, %s5009_s10, %s5010_s12  }
  0xa9   : > { %s4285_s5 = smov [#allocation12]   ;;  %s4286_s4 = smov [#allocation15]  }
  0xaa   : > { %s506_s2 = sshll.u32 %s4285_s5, 4  ;;  %s538_s1 = sshll.u32 %s4286_s4, 4  ;;  %s507_s2 = int_to_ptr.vmem [resolvable:$true] %s506_s2  ;;  %s539_s1 = int_to_ptr.vmem [resolvable:$true] %s538_s1 }
  0xab   : > { %s5038_s7 = sld [smem:[#allocation36_spill]] }
  0xb1   : > { %s4048_s17 = scalar_lea.hbm %s5038_s7, 3072 }
  0xb2   : > { %p4049_p1 = scmp.ne.s32.totalorder %s5038_s7, %s4048_s17  ;;  %p4055_p12 = scmp.lt.u32.totalorder %s4048_s17, %s5038_s7 }
  0xb4   : > { %p4051_p3 = pnand %p4049_p1, %p4460_p7 }
  0xb6   : > { %p4052_p11 = pneg %p4051_p3 }
  0xb8   : > { %p4057_p13 = pnand %p4055_p12, %p4052_p11 }
  0xba   : > { %4060 = shalt.err (!%p4057_p13)
}
  0xbb   : > { %s4061_s14 = scalar_lea.vmem %s507_s2, 3072  ;;  %p4069_p6 = scmp.lt.s32.totalorder %s507_s2, %s507_s2 }
  0xbc   : > { %p4062_p0 = scmp.ne.s32.totalorder %s507_s2, %s4061_s14  ;;  %p4070_p8 = scmp.lt.s32.totalorder %s4061_s14, %s4061_s14 }
  0xbe   : > { %p4064_p2 = pnand %p4062_p0, %p4460_p7  ;;  %p4071_p9 = por %p4070_p8, %p4069_p6 }
  0xc0   : > { %p4065_p4 = pneg %p4064_p2 }
  0xc2   : > { %p4072_p10 = pnand %p4071_p9, %p4065_p4 }
  0xc4   : > { %4075 = shalt.err (!%p4072_p10)
}
  0xc5   : > { %3628 = dma.hbm_to_vmem [thread:$0]  (!%p4444_p5), %s5038_s7, 3072, %s507_s2, [#allocation11], %s5009_s10, %s5009_s10, %s5010_s12  }
  0xc6   : > { %s4076_s23 = scalar_lea.hbm %s4994_s11, 1024 }
  0xc7   : > { %p4077_p1 = scmp.ne.s32.totalorder %s4994_s11, %s4076_s23  ;;  %p4083_p12 = scmp.lt.u32.totalorder %s4076_s23, %s4994_s11 }
  0xc9   : > { %p4079_p3 = pnand %p4077_p1, %p4460_p7 }
  0xcb   : > { %p4080_p11 = pneg %p4079_p3 }
  0xcd   : > { %p4085_p13 = pnand %p4083_p12, %p4080_p11 }
  0xcf   : > { %4088 = shalt.err (!%p4085_p13)
}
  0xd0   : > { %s4089_s27 = scalar_lea.vmem %s539_s1, 1024  ;;  %p4097_p6 = scmp.lt.s32.totalorder %s539_s1, %s539_s1 }
  0xd1   : > { %p4090_p0 = scmp.ne.s32.totalorder %s539_s1, %s4089_s27  ;;  %p4098_p8 = scmp.lt.s32.totalorder %s4089_s27, %s4089_s27 }
  0xd3   : > { %p4092_p2 = pnand %p4090_p0, %p4460_p7  ;;  %p4099_p9 = por %p4098_p8, %p4097_p6 }
  0xd5   : > { %p4093_p4 = pneg %p4092_p2 }
  0xd7   : > { %p4100_p10 = pnand %p4099_p9, %p4093_p4 }
  0xd9   : > { %4103 = shalt.err (!%p4100_p10)
}
  0xda   : > { %3634 = dma.hbm_to_vmem [thread:$0]  (!%p4444_p5), %s4994_s11, 1024, %s539_s1, [#allocation14], %s5009_s10, %s5009_s10, %s5010_s12  }
  0xdb   : > { %s4287_s16 = smov [#allocation18]   ;;  %s4104_s23 = scalar_lea.hbm %s4998_s15, 3072 }
  0xdc   : > { %s570_s5 = sshll.u32 %s4287_s16, 4  ;;  %p4105_p1 = scmp.ne.s32.totalorder %s4998_s15, %s4104_s23  ;;  %s571_s5 = int_to_ptr.vmem [resolvable:$true] %s570_s5 }
  0xdd   : > { %p4111_p12 = scmp.lt.u32.totalorder %s4104_s23, %s4998_s15 }
  0xde   : > { %p4107_p3 = pnand %p4105_p1, %p4460_p7 }
  0xe0   : > { %p4108_p11 = pneg %p4107_p3 }
  0xe2   : > { %p4113_p13 = pnand %p4111_p12, %p4108_p11 }
  0xe4   : > { %4116 = shalt.err (!%p4113_p13)
}
  0xe5   : > { %s4117_s1 = scalar_lea.vmem %s571_s5, 3072  ;;  %p4125_p6 = scmp.lt.s32.totalorder %s571_s5, %s571_s5 }
  0xe6   : > { %p4118_p0 = scmp.ne.s32.totalorder %s571_s5, %s4117_s1  ;;  %p4126_p8 = scmp.lt.s32.totalorder %s4117_s1, %s4117_s1 }
  0xe8   : > { %p4120_p2 = pnand %p4118_p0, %p4460_p7  ;;  %p4127_p9 = por %p4126_p8, %p4125_p6 }
  0xea   : > { %p4121_p4 = pneg %p4120_p2 }
  0xec   : > { %p4128_p10 = pnand %p4127_p9, %p4121_p4 }
  0xee   : > { %4131 = shalt.err (!%p4128_p10)
}
  0xef   : > { %3640 = dma.hbm_to_vmem [thread:$0]  (!%p4444_p5), %s4998_s15, 3072, %s571_s5, [#allocation17], %s5009_s10, %s5009_s10, %s5010_s12  }
  0xf0   : > { %s3013_s6 = sadd.s32 4294967294, %s4276_s30   ;;  %s46_s22 = sadd.s32 1, %s4268_s29 }
  0xf1   : > { %p47_p7 = scmp.ge.s32.totalorder %s46_s22, 3  ;;  %s49_s14 = sadd.s32 1, %s4272_s0 }
  0xf2   : > { %s58_s16 = sadd.s32 1, %s4256_s26  ;;  %p65_p1 = scmp.ne.s32.totalorder %s4256_s26, %s4252_s25 }
  0xf3   : > { %s5079_s22 = smov (%p47_p7, %s46_s22), 0  ;;  %s5081_s14 = smov (!%p47_p7, %s49_s14), %s4272_s0 }
  0xf4   : > { %s54_s4 = ssub.s32 %s4268_s29, %s5079_s22  ;;  %p66_p3 = scmp.eq.s32.totalorder %s4276_s30, 0 }
  0xf5   : > { %p51_p11 = scmp.ge.s32.totalorder %s5081_s14, 2  ;;  %p71_p5 = scmp.ne.s32.totalorder %s4252_s25, %s4248_s24 }
  0xf6   : > { %p4651_p12 = por %p66_p3, %p65_p1  ;;  %s5040_s28 = sadd.s32 4294967295, %s4276_s30  }
  0xf7   : > { %p433_p13 = scmp.eq.s32.totalorder %s5040_s28, 5  ;;  %s5083_s14 = smov (%p51_p11, %s5081_s14), 0 }
  0xf8   : > { %p5041_p0 = scmp.ne.s32.totalorder %s5029_s19, 0  ;;  %s53_s8 = ssub.s32 %s4272_s0, %s5083_s14 }
  0xf9   : > { %p4665_p4 = por %p433_p13, %p65_p1  ;;  %p439_p6 = scmp.eq.s32.totalorder %s3013_s6, 5 }
  0xfa   : > { %p4661_p2 = por %p5041_p0, %p71_p5  ;;  %s55_s21 = sor.u32 %s54_s4, %s53_s8 }
  0xfb   : > { %s5043_s17 = scalar_select %p4665_p4, 1, 0 }
  0xfc   : > { %p3657_p8 = scmp.lt.s32.totalorder %s4276_s30, 6  ;;  %p56_p9 = scmp.eq.s32.totalorder %s55_s21, 0 }
  0xfd   : > { %p4672_p10 = por %p439_p6, %p71_p5  ;;  %s587_s1 = sand.u32 1, %s4256_s26  }
  0xfe   : > { %s3025_s27 = sshll.u32 %s4268_s29, 1  ;;  %s3024_s28 = sshll.u32 %s587_s1, 3 }
  0xff   : > { %s5044_s18 = scalar_select %p4672_p10, 1, 0 }
 0x100   : > { %s4679_s2 = scalar_select %p56_p9, %s4256_s26, %s58_s16  }
 0x101   : > { %s3578_s10 = smul.u32 6, %s4272_s0  ;;  %s591_s12 = scalar_lea.vmem [#allocation4], %s3024_s28 }
 0x102   : > { %s600_s3 = sshll.u32 %s591_s12, 4  ;;  %p4684_p7 = pnand %p3657_p8, %p4651_p12  ;;  %s4688_s3 = int_to_ptr.vmem [resolvable:$true] %s600_s3 }
 0x103   : > { %s597_s6 = sadd.s32 %s3578_s10, %s3025_s27  ;;  %s5046_s9 = sld [smem:[#allocation29_spill]] }
 0x104   : > { %s3026_s4 = sshll.u32 %s597_s6, 6  ;;  %s4695_s12 = scalar_lea.sflag [#allocation5], %s587_s1 }
 0x105   : > { %p4134_p3 = pneg %p4684_p7 }
 0x109   : > { %s4693_s16 = scalar_lea.hbm %s5046_s9, %s3026_s4  ;;  %s4137_s28 = scalar_lea.hbm %s5046_s9, 768 }
 0x10a   : > { %s4132_s5 = scalar_lea.hbm %s4693_s16, 128  ;;  %p4138_p12 = scmp.lt.u32.totalorder %s4693_s16, %s5046_s9 }
 0x10b   : > { %p4133_p1 = scmp.ne.s32.totalorder %s4693_s16, %s4132_s5  ;;  %p4139_p13 = scmp.lt.u32.totalorder %s4137_s28, %s4132_s5 }
 0x10c   : > { %p4141_p6 = scmp.lt.u32.totalorder %s4132_s5, %s4693_s16 }
 0x10d   : > { %p4135_p11 = pnand %p4134_p3, %p4133_p1  ;;  %p4140_p0 = por %p4139_p13, %p4138_p12 }
 0x10f   : > { %p4136_p5 = pneg %p4135_p11  ;;  %p4142_p8 = por %p4141_p6, %p4140_p0 }
 0x111   : > { %p4143_p9 = pnand %p4142_p8, %p4136_p5 }
 0x113   : > { %4146 = shalt.err (!%p4143_p9)
}
 0x114   : > { %s4147_s1 = scalar_lea.vmem %s4688_s3, 128  ;;  %s4288_s8 = smov [#allocation4]  }
 0x115   : > { %p4148_p1 = scmp.ne.s32.totalorder %s4688_s3, %s4147_s1  ;;  %s4152_s21 = sshll.u32 %s4288_s8, 4  ;;  %s4153_s21 = int_to_ptr.vmem [resolvable:$false] %s4152_s21 }
 0x116   : > { %s4154_s10 = scalar_lea.vmem %s4153_s21, 256  ;;  %p4155_p4 = scmp.lt.s32.totalorder %s4688_s3, %s4153_s21 }
 0x117   : > { %p4150_p11 = pnand %p4148_p1, %p4134_p3  ;;  %p4156_p12 = scmp.lt.s32.totalorder %s4154_s10, %s4147_s1 }
 0x119   : > { %p4151_p10 = pneg %p4150_p11  ;;  %p4157_p13 = por %p4156_p12, %p4155_p4 }
 0x11b   : > { %p4158_p0 = pnand %p4157_p13, %p4151_p10 }
 0x11d   : > { %4161 = shalt.err (!%p4158_p0)
}
 0x11e   : > { %s5047_s5 = smov 4   ;;  %s5048_s27 = smov 64  }
 0x11f   : > { %3644 = dma.hbm_to_vmem [thread:$0]  (!%p4684_p7), %s4693_s16, 128, %s4688_s3, %s4695_s12, %s5048_s27, %s5048_s27, %s5047_s5  }
 0x120   : > { %s5049_s28 = sld [smem:[#allocation28_spill]] }
 0x126   : > { %p5050_p3 = scmp.ne.s32.totalorder %s5049_s28, 0 }
 0x127   : > { %s4729_s6 = sand.u32 (!%p5050_p3), 1, %s4252_s25  }
 0x128   : > { %612 = sbr.rel (%p5050_p3) target bundleno = 1833 (0x729), region = 88  ;;  %s3028_s4 = sshll.u32 (!%p5050_p3), %s4729_s6, 3 }
 0x129   : > { %s615_s1 = scalar_lea.sflag (!%p5050_p3), [#allocation5], %s4729_s6  ;;  %s4733_s8 = scalar_lea.vmem (!%p5050_p3), [#allocation4], %s3028_s4 }
 0x12f   : > { %4223 = dma.done.wait (%p4661_p2), %s615_s1, 128  }
 0x130   : > { %4225 = vsyncadd (%p4661_p2), %s615_s1, 4294967168  ;;  %p5051_p4 = scmp.ne.s32.totalorder %s5029_s19, 0 }
 0x132   : > { %4227 = dma.done.wait (%p5051_p4), [#allocation8], 6144  }
 0x133   : > { %4229 = vsyncadd (%p5051_p4), [#allocation8], 4294961152 }
 0x134   : > { %4231 = dma.done.wait (%p5051_p4), [#allocation11], 4096  }
 0x135   : > { %4233 = vsyncadd (%p5051_p4), [#allocation11], 4294963200 }
 0x136   : > { %4235 = dma.done.wait (%p5051_p4), [#allocation14], 4096  }
 0x137   : > { %4237 = vsyncadd (%p5051_p4), [#allocation14], 4294963200 }
 0x138   : > { %4239 = dma.done.wait (%p5051_p4), [#allocation17], 6144  }
 0x139   : > { %4241 = vsyncadd (%p5051_p4), [#allocation17], 4294961152  ;;  %s3037_s3 = sshll.u32 %s4729_s6, 4  ;;  %s5052_s23 = sld [smem:[#allocation26_spill]] }
 0x13a   : > { %s4756_s7 = scalar_lea.vmem [#allocation19], %s3037_s3 }
 0x13f   : > { %p3038_p2 = scmp.ne.s32.totalorder %s5052_s23, 0 }
 0x140   : > { %v4289_v0 = vmov (!%p3038_p2), 0  }
 0x141   : > { %707 = sbr.rel (%p3038_p2) target bundleno = 328 (0x148), region = 128  ;;  %708 = vst [vmem:[#allocation3] sm:$0xff] (!%p3038_p2), %v4289_v0  ;;  %709 = vst [vmem:[#allocation3 + $0x8] sm:$0xff] (!%p3038_p2), %v4289_v0 }
 0x142   : > { %710 = vst [vmem:[#allocation3 + $0x10] sm:$0xff] (!%p3038_p2), %v4289_v0  ;;  %711 = vst [vmem:[#allocation3 + $0x18] sm:$0xff] (!%p3038_p2), %v4289_v0 }
 0x143   : > { %712 = vst [vmem:[#allocation3 + $0x20] sm:$0xff] (!%p3038_p2), %v4289_v0  ;;  %713 = vst [vmem:[#allocation3 + $0x28] sm:$0xff] (!%p3038_p2), %v4289_v0 }
 0x148 PF: > { %v3746_v1 = vld [vmem:[#allocation10] sm:$0xff]   ;;  %v4290_v2 = vmov 0.0   ;;  %v3747_v3 = vld [vmem:[#allocation10 + $0x8] sm:$0xff]   ;;  %vm4291_vm0 = vmmov 0   ;;  %v3748_v4 = vld [vmem:[#allocation10 + $0x10] sm:$0xff]   ;;  %vm845_vm1 = vcmask 1040384  }
 0x149   : > { %3418 = vmatprep.subr.bf16.mxu0 %v4290_v2  ;;  %3434 = vmatprep.mubr.msk.bf16.mxu0 %vm4291_vm0, %v4290_v2  ;;  %v3752_v5 = vld [vmem:[#allocation7 + $0x40] sm:$0xff]   ;;  %v3755_v7 = vld [vmem:[#allocation7 + $0x48] sm:$0xff]   ;;  %v3749_v8 = vld [vmem:[#allocation10 + $0x18] sm:$0xff]   ;;  %vm846_vm2 = vsmask.f32 256  ;;  %vm860_vm4 = vcmask 1047552  }
 0x14a   : > { %3419 = vmatpush3.bf16.msra.mxu0 %v3746_v1  ;;  %3223 = vmatprep.subr.bf16.mxu1 %v3752_v5  ;;  %v3754_v6 = vld [vmem:[#allocation7] sm:$0xff]   ;;  %v3757_v9 = vld [vmem:[#allocation7 + $0x8] sm:$0xff]   ;;  %v714_v10 = vld [vmem:[%s4733_s8] sm:$0xf]  ;;  %vm861_vm5 = vsmask.f32 7938 }
 0x14b   : > { %3420 = vmatprep.subr.bf16.mxu0 %v4290_v2  ;;  %3224 = vmatpush3.bf16.msra.mxu1 %v3754_v6  ;;  %v715_v11 = vld [vmem:[%s4733_s8 + $0x4] sm:$0xf]  ;;  %v834_v12 = vld [vmem:[#allocation3] sm:$0x1]  ;;  %v3751_v21 = vld [vmem:[#allocation10 + $0x28] sm:$0xff]   ;;  %s5057_s12 = sld [smem:[#allocation31_spill]] }
 0x14c   : > { %3225 = vmatprep.subr.bf16.mxu1 %v3755_v7  ;;  %v3750_v13 = vld [vmem:[#allocation10 + $0x20] sm:$0xff]   ;;  %v4767_v14 = vcombine.low %v714_v10, %v715_v11  ;;  %835 = vst [vmem:[#allocation2] sm:$0x1] %v834_v12  ;;  %v3049_v15 = vcombine.low %v715_v11, %v715_v11  ;;  %v3760_v17 = vld [vmem:[#allocation7 + $0x50] sm:$0xff]   ;;  %v3763_v22 = vld [vmem:[#allocation7 + $0x58] sm:$0xff]   ;;  %s5058_s5 = sld [smem:[#allocation33_spill]] }
 0x14d   : > { %v840_v16 = vld [vmem:[#allocation3] sm:$0x1]  ;;  %v3761_v20 = vld [vmem:[#allocation7 + $0x10] sm:$0xff]   ;;  %v3764_v23 = vld [vmem:[#allocation7 + $0x18] sm:$0xff]   ;;  %s5059_s4 = sld [smem:[#allocation35_spill]]  ;;  %s5060_s3 = sld [smem:[#allocation37_spill]] }
 0x14e   : > { %3421 = vmatpush3.bf16.msra.mxu0 %v3747_v3  ;;  %v836_v18 = vrot.slane %v4767_v14, 7  ;;  %v871_v19 = vrot.slane %v3049_v15, 3  ;;  %v3766_v24 = vld [vmem:[#allocation7 + $0x60] sm:$0xff]   ;;  %v3753_v25 = vld [vmem:[#allocation10 + $0x30] sm:$0xff]   ;;  %v3769_v27 = vld [vmem:[#allocation7 + $0x68] sm:$0xff]   ;;  %v852_v31 = vshrl.u32 %v4767_v14, 16 }
 0x14f   : > { %3422 = vmatprep.subr.bf16.mxu0 %v4290_v2  ;;  %3226 = vmatpush3.bf16.msra.mxu1 %v3757_v9  ;;  %v3767_v26 = vld [vmem:[#allocation7 + $0x20] sm:$0xff]   ;;  %v3756_v28 = vld [vmem:[#allocation10 + $0x38] sm:$0xff]   ;;  %v3770_v29 = vld [vmem:[#allocation7 + $0x28] sm:$0xff]   ;;  %v842_v33 = vshrl.u32 %v840_v16, 16  ;;  %v855_v44 = vshll.u32 %v4767_v14, 16  ;;  %s5061_s16 = sld [smem:[#allocation39_spill]] }
 0x150   : > { %3227 = vmatprep.subr.bf16.mxu1 %v3760_v17  ;;  %838 = vst [vmem:[#allocation2] sm:$0xfe] %v836_v18  ;;  %873 = vst [vmem:[#allocation3] sm:$0x1] %v871_v19  ;;  %v3772_v30 = vld [vmem:[#allocation7 + $0x70] sm:$0xff]   ;;  %v3762_v32 = vld [vmem:[#allocation7 + $0x80] sm:$0xff]  }
 0x151   : > { %v3773_v34 = vld [vmem:[#allocation7 + $0x30] sm:$0xff]   ;;  %v3775_v35 = vld [vmem:[#allocation7 + $0x78] sm:$0xff]   ;;  %v854_v37 = vrot.slane %v852_v31, 7  ;;  %vm4776_vm3 = vmand %vm845_vm1, %vm846_vm2  ;;  %s5062_s10 = sld [smem:[#allocation40_spill]]  ;;  %s5063_s28 = sld [smem:[#allocation41_spill]] }
 0x152   : > { %3423 = vmatpush3.bf16.msra.mxu0 %v3748_v4  ;;  %v848_v36 = vld [vmem:[#allocation2 + $0x8] sm:$0x1]  ;;  %v866_v39 = vld [vmem:[#allocation2 + $0x20] sm:$0x1]  ;;  %v3765_v40 = vld [vmem:[#allocation7 + $0x88] sm:$0xff]   ;;  %s5065_s1 = sld [smem:[#allocation26_spill]] }
 0x153   : > { %3424 = vmatprep.subr.bf16.mxu0 %v4290_v2  ;;  %3228 = vmatpush3.bf16.msra.mxu1 %v3761_v20  ;;  %v849_v41 = vsel %vm4776_vm3, %v842_v33, %v848_v36  ;;  %v867_v42 = vsel %vm4776_vm3, %v854_v37, %v866_v39  ;;  %v3776_v43 = vld [vmem:[#allocation7 + $0x38] sm:$0xff]   ;;  %vm4788_vm6 = vmand %vm860_vm4, %vm861_vm5  ;;  %v3768_v46 = vld [vmem:[#allocation7 + $0x90] sm:$0xff]   ;;  %v857_v48 = vor.u32 %v855_v44, %v854_v37  ;;  %s5066_s23 = sld [smem:[#allocation42_spill]]  ;;  %s2831_s8 = scalar_lea.sflag [#allocation6], %s4729_s6 }
 0x154   : > { %3229 = vmatprep.subr.bf16.mxu1 %v3763_v22  ;;  %850 = vst [vmem:[#allocation2 + $0x8] sm:$0x1] %v849_v41  ;;  %868 = vst [vmem:[#allocation2 + $0x20] sm:$0x1] %v867_v42  ;;  %v1169_v47 = vld [vmem:[#allocation3 + $0x8] sm:$0x1] }
 0x155   : > { %v3771_v50 = vld [vmem:[#allocation7 + $0x98] sm:$0xff]   ;;  %v1171_v52 = vshrl.u32 %v1169_v47, 16  ;;  %v3774_v54 = vld [vmem:[#allocation7 + $0xa0] sm:$0xff]   ;;  %v3777_v55 = vld [vmem:[#allocation7 + $0xa8] sm:$0xff]   ;;  %p5069_p7 = scmp.ne.s32.totalorder %s5043_s17, 0 }
 0x156   : > { %3425 = vmatpush3.bf16.msra.mxu0 %v3749_v8  ;;  %v3778_v58 = vld [vmem:[#allocation7 + $0xb0] sm:$0xff]   ;;  %v3779_v59 = vld [vmem:[#allocation7 + $0xb8] sm:$0xff]   ;;  %v3780_v60 = vld [vmem:[#allocation9 + $0x80] sm:$0xff]  }
 0x157   : > { %3426 = vmatprep.subr.bf16.mxu0 %v4290_v2  ;;  %3230 = vmatpush3.bf16.msra.mxu1 %v3764_v23  ;;  %v874_v49 = vld [vmem:[#allocation2] sm:$0xff]  ;;  %v3781_v61 = vld [vmem:[#allocation9 + $0x88] sm:$0xff]   ;;  %v3782_v62 = vld [vmem:[#allocation9 + $0x40] sm:$0xff]  }
 0x158   : > { %3231 = vmatprep.subr.bf16.mxu1 %v3766_v24  ;;  %v3783_v63 = vld [vmem:[#allocation9] sm:$0xff]   ;;  %v3784_v0 = vld [vmem:[#allocation9 + $0x90] sm:$0xff]   ;;  %v3785_v1 = vld [vmem:[#allocation9 + $0x48] sm:$0xff]  }
 0x159   : > { %v3787_v3 = vld [vmem:[#allocation9 + $0x98] sm:$0xff]   ;;  %v3786_v4 = vld [vmem:[#allocation9 + $0x8] sm:$0xff]   ;;  %v3790_v5 = vld [vmem:[#allocation9 + $0xa0] sm:$0xff]  }
 0x15a   : > { %3427 = vmatpush3.bf16.msra.mxu0 %v3750_v13  ;;  %v3788_v6 = vld [vmem:[#allocation9 + $0x50] sm:$0xff]   ;;  %v3793_v8 = vld [vmem:[#allocation9 + $0xa8] sm:$0xff]   ;;  %v3791_v9 = vld [vmem:[#allocation9 + $0x58] sm:$0xff]  }
 0x15b   : > { %3428 = vmatprep.subr.bf16.mxu0 %v4290_v2  ;;  %3232 = vmatpush3.bf16.msra.mxu1 %v3767_v26  ;;  %v863_v51 = vld [vmem:[#allocation2 + $0x8] sm:$0xff]  ;;  %v3789_v7 = vld [vmem:[#allocation9 + $0x10] sm:$0xff]   ;;  %v3794_v12 = vld [vmem:[#allocation9 + $0x60] sm:$0xff]  }
 0x15c   : > { %3233 = vmatprep.subr.bf16.mxu1 %v3769_v27  ;;  %v864_v53 = vsel %vm4788_vm6, %v857_v48, %v863_v51  ;;  %v3792_v10 = vld [vmem:[#allocation9 + $0x18] sm:$0xff]   ;;  %v3796_v11 = vld [vmem:[#allocation9 + $0xb0] sm:$0xff]   ;;  %v3795_v13 = vld [vmem:[#allocation9 + $0x20] sm:$0xff]  }
 0x15d   : > { %865 = vst [vmem:[#allocation2 + $0x8] sm:$0xff] %v864_v53  ;;  %1108 = vmatprep.mubr.bf16.mxu1 %v864_v53  ;;  %v3797_v15 = vld [vmem:[#allocation9 + $0x68] sm:$0xff]   ;;  %v3800_v18 = vld [vmem:[#allocation9 + $0x70] sm:$0xff]   ;;  %v3802_v20 = vld [vmem:[#allocation9 + $0x78] sm:$0xff]  }
 0x15e   : > { %3429 = vmatpush3.bf16.msra.mxu0 %v3751_v21  ;;  %v3798_v16 = vld [vmem:[#allocation9 + $0x28] sm:$0xff]   ;;  %v3801_v19 = vld [vmem:[#allocation9 + $0x30] sm:$0xff]   ;;  %v3803_v21 = vld [vmem:[#allocation9 + $0x38] sm:$0xff]  }
 0x15f   : > { %3430 = vmatprep.subr.bf16.mxu0 %v4290_v2  ;;  %3234 = vmatpush3.bf16.msra.mxu1 %v3770_v29  ;;  %v1162_v17 = vld [vmem:[#allocation3 + $0x8] sm:$0x1]  ;;  %v1189_v48 = vld [vmem:[#allocation2 + $0x20] sm:$0x1]  ;;  %v3807_v45 = vld [vmem:[#allocation12 + $0x40] sm:$0xff]  }
 0x160   : > { %3235 = vmatprep.subr.bf16.mxu1 %v3772_v30  ;;  %1163 = vst [vmem:[#allocation2] sm:$0x1] %v1162_v17  ;;  %v3806_v38 = vld [vmem:[#allocation15 + $0x10] sm:$0xff]   ;;  %v3829_v17 = vld [vmem:[#allocation12 + $0x38] sm:$0xff]  }
 0x162   : > { %3431 = vmatpush3.bf16.msra.mxu0 %v3753_v25 }
 0x163   : > { %3432 = vmatprep.subr.bf16.mxu0 %v4290_v2  ;;  %3236 = vmatpush3.bf16.msra.mxu1 %v3773_v34 }
 0x164   : > { %3237 = vmatprep.subr.bf16.mxu1 %v3775_v35  ;;  %v1174_v56 = vld [vmem:[#allocation2 + $0x8] sm:$0x1] }
 0x165   : > { %v1175_v57 = vsel %vm4776_vm3, %v1171_v52, %v1174_v56  ;;  %v3804_v56 = vld [vmem:[#allocation15] sm:$0xff]  }
 0x166   : > { %3433 = vmatpush3.bf16.msra.mxu0 %v3756_v28  ;;  %1176 = vst [vmem:[#allocation2 + $0x8] sm:$0x1] %v1175_v57 }
 0x167   : > { %3438 = vmatprep.subr.bf16.mxu0 %v4290_v2  ;;  %3238 = vmatpush3.bf16.msra.mxu1 %v3776_v43 }
 0x168   : > { %3254 = vmatprep.subr.bf16.mxu1 %v3782_v62  ;;  %v3811_v62 = vld [vmem:[#allocation15 + $0x20] sm:$0xff]  }
 0x169   : > { %3435 = vmatmul.mubr.bf16.vlgmr.msra.gmra.mrb[0].mxu0 %v4767_v14 }
 0x16a   : > { %3439 = vmatpush3.bf16.msra.mxu0 %v3762_v32  ;;  %3454 = vmatprep.mubr.msk.bf16.mxu0 %vm4291_vm0, %v4290_v2  ;;  %v3050_v32 = vld [vmem:[%s5057_s12] ss:$0 sm:$0xff] }
 0x16b   : > { %3440 = vmatprep.subr.bf16.mxu0 %v4290_v2  ;;  %1109 = vmatmul.mubr.bf16.vlgmr.msra.gmra.mrb[0].mxu1 %v874_v49 }
 0x16c   : > { %3255 = vmatpush3.bf16.msra.mxu1 %v3783_v63  ;;  %v3812_v63 = vld [vmem:[#allocation12 + $0x8] sm:$0xff]  }
 0x16d   : > { %3256 = vmatprep.subr.bf16.mxu1 %v3785_v1  ;;  %v1186_v51 = vld [vmem:[#allocation2 + $0x8] sm:$0xff]  ;;  %v3814_v1 = vld [vmem:[#allocation15 + $0x28] sm:$0xff]  }
 0x16e   : > { %3441 = vmatpush3.bf16.msra.mxu0 %v3765_v40 }
 0x16f   : > { %3442 = vmatprep.subr.bf16.mxu0 %v4290_v2 }
 0x170   : > { %3257 = vmatpush3.bf16.msra.mxu1 %v3786_v4  ;;  %v3816_v4 = vld [vmem:[#allocation12 + $0x58] sm:$0xff]  }
 0x171   : > { %3258 = vmatprep.subr.bf16.mxu1 %v3788_v6  ;;  %v3818_v6 = vld [vmem:[#allocation12 + $0x18] sm:$0xff]  }
 0x172   : > { %3443 = vmatpush3.bf16.msra.mxu0 %v3768_v46 }
 0x173   : > { %3444 = vmatprep.subr.bf16.mxu0 %v4290_v2 }
 0x174   : > { %3259 = vmatpush3.bf16.msra.mxu1 %v3789_v7  ;;  %v3819_v7 = vld [vmem:[#allocation12 + $0x60] sm:$0xff]  }
 0x175   : > { %3260 = vmatprep.subr.bf16.mxu1 %v3791_v9  ;;  %v3821_v9 = vld [vmem:[#allocation12 + $0x20] sm:$0xff]  }
 0x176   : > { %3445 = vmatpush3.bf16.msra.mxu0 %v3771_v50 }
 0x177   : > { %3446 = vmatprep.subr.bf16.mxu0 %v4290_v2 }
 0x178   : > { %3261 = vmatpush3.bf16.msra.mxu1 %v3792_v10  ;;  %v3822_v10 = vld [vmem:[#allocation12 + $0x68] sm:$0xff]  }
 0x179   : > { %3262 = vmatprep.subr.bf16.mxu1 %v3794_v12  ;;  %v1605_v12 = vld [vmem:[#allocation3 + $0x10] sm:$0x2] }
 0x17a   : > { %3447 = vmatpush3.bf16.msra.mxu0 %v3774_v54 }
 0x17b   : > { %3448 = vmatprep.subr.bf16.mxu0 %v4290_v2 }
 0x17c   : > { %3263 = vmatpush3.bf16.msra.mxu1 %v3795_v13  ;;  %v1607_v13 = vrot.slane %v1605_v12, 1  ;;  %v3853_v12 = vld [vmem:[#allocation13 + $0x28] sm:$0xff]  }
 0x17d   : > { %3264 = vmatprep.subr.bf16.mxu1 %v3797_v15  ;;  %v3826_v15 = vld [vmem:[#allocation12 + $0x30] sm:$0xff]  }
 0x17e   : > { %3449 = vmatpush3.bf16.msra.mxu0 %v3777_v55  ;;  %v1598_v55 = vld [vmem:[#allocation3 + $0x10] sm:$0x3] }
 0x17f   : > { %3450 = vmatprep.subr.bf16.mxu0 %v4290_v2 }
 0x180   : > { %3265 = vmatpush3.bf16.msra.mxu1 %v3798_v16  ;;  %v3828_v16 = vld [vmem:[#allocation12 + $0x78] sm:$0xff]  }
 0x181   : > { %3266 = vmatprep.subr.bf16.mxu1 %v3800_v18 }
 0x182   : > { %3451 = vmatpush3.bf16.msra.mxu0 %v3778_v58  ;;  %v3805_v58 = vld [vmem:[#allocation15 + $0x8] sm:$0xff]  }
 0x183   : > { %3452 = vmatprep.subr.bf16.mxu0 %v4290_v2 }
 0x184   : > { %3267 = vmatpush3.bf16.msra.mxu1 %v3801_v19 }
 0x185   : > { %3268 = vmatprep.subr.bf16.mxu1 %v3802_v20 }
 0x186   : > { %3453 = vmatpush3.bf16.msra.mxu0 %v3779_v59  ;;  %v3809_v59 = vld [vmem:[#allocation12] sm:$0xff]  }
 0x187   : > { %3458 = vmatprep.subr.bf16.mxu0 %v4290_v2 }
 0x188   : > { %3269 = vmatpush3.bf16.msra.mxu1 %v3803_v21 }
 0x189   : > { %3455 = vmatmul.mubr.bf16.vlgmr.msra.gmra.mrb[4].mxu0 %v4767_v14  ;;  %v3799_v14 = vld [vmem:[#allocation9 + $0xb8] sm:$0xff]   ;;  %3478 = vmatprep.subr.bf16.mxu1 %v4290_v2 }
 0x18a   : > { %3474 = vmatprep.mubr.msk.bf16.mxu0 %vm4291_vm0, %v4290_v2  ;;  %3459 = vmatpush3.bf16.msra.mxu0 %v3780_v60  ;;  %v3808_v60 = vld [vmem:[#allocation15 + $0x18] sm:$0xff]  }
 0x18b   : > { %3460 = vmatprep.subr.bf16.mxu0 %v4290_v2 }
 0x18e   : > { %3461 = vmatpush3.bf16.msra.mxu0 %v3781_v61  ;;  %v3810_v61 = vld [vmem:[#allocation12 + $0x48] sm:$0xff]  }
 0x18f   : > { %3462 = vmatprep.subr.bf16.mxu0 %v4290_v2 }
 0x192   : > { %3463 = vmatpush3.bf16.msra.mxu0 %v3784_v0  ;;  %v3813_v0 = vld [vmem:[#allocation12 + $0x50] sm:$0xff]  }
 0x193   : > { %3464 = vmatprep.subr.bf16.mxu0 %v4290_v2 }
 0x196   : > { %3465 = vmatpush3.bf16.msra.mxu0 %v3787_v3  ;;  %v3815_v3 = vld [vmem:[#allocation12 + $0x10] sm:$0xff]  }
 0x197   : > { %3466 = vmatprep.subr.bf16.mxu0 %v4290_v2 }
 0x19a   : > { %3467 = vmatpush3.bf16.msra.mxu0 %v3790_v5  ;;  %v3817_v5 = vld [vmem:[#allocation15 + $0x30] sm:$0xff]  }
 0x19b   : > { %3468 = vmatprep.subr.bf16.mxu0 %v4290_v2 }
 0x19e   : > { %3469 = vmatpush3.bf16.msra.mxu0 %v3793_v8  ;;  %v3820_v8 = vld [vmem:[#allocation15 + $0x38] sm:$0xff]  }
 0x19f   : > { %3470 = vmatprep.subr.bf16.mxu0 %v4290_v2 }
 0x1a2   : > { %3471 = vmatpush3.bf16.msra.mxu0 %v3796_v11  ;;  %v3823_v11 = vld [vmem:[#allocation12 + $0x28] sm:$0xff]  }
 0x1a3   : > { %3472 = vmatprep.subr.bf16.mxu0 %v4290_v2 }
 0x1a6   : > { %3473 = vmatpush3.bf16.msra.mxu0 %v3799_v14  ;;  %v3825_v14 = vld [vmem:[#allocation12 + $0x70] sm:$0xff]  }
 0x1a7   : > { %3294 = vmatprep.subr.bf16.mxu0 %v3807_v45  ;;  %v3838_v45 = vld [vmem:[#allocation13] sm:$0xff]  }
 0x23c   : > { %v4816_v22 = vpop.f32.mrb[0].mxu0 }
 0x23d   : > { %v3436_v23 = vpop.f32.mrb[1].mxu0 }
 0x23e   : > { %v4818_v24 = vpop.f32.mrb[2].mxu0  ;;  %v3239_v26 = vpop.f32.mrb[0].mxu1 }
 0x23f   : > { %v3437_v25 = vpop.f32.mrb[3].mxu0  ;;  %v3240_v27 = vpop.f32.mrb[1].mxu1 }
 0x240   : > { %v3241_v28 = vadd.f32 %v3240_v27, %v3239_v26  ;;  %v3242_v29 = vpop.f32.mrb[2].mxu1  ;;  %v3075_v25 = vld [vmem:[%s5058_s5] ss:$0 sm:$0xff] }
 0x241   : > { %v3243_v30 = vpop.f32.mrb[3].mxu1 }
 0x242   : > { %v3244_v31 = vadd.f32 %v3243_v30, %v3242_v29  ;;  %v1111_v33 = vadd.f32 %v3241_v28, %v3050_v32 }
 0x244   : > { %v1114_v37 = vadd.f32 %v3244_v31, %v3050_v32  ;;  %v3039_v32 = vld [vmem:[%s5059_s4] ss:$0 sm:$0xff]  ;;  %s5064_s4 = sld [smem:[#allocation27_spill]] }
 0x24a   : > { %s3579_s19 = smul.u32 6, %s5064_s4 }
 0x25c   : > { %v1151_v34 = vpop.f32.mrb[4].mxu0 }
 0x25d   : > { %v1152_v35 = vadd.f32 %v1151_v34, %v1111_v33  ;;  %v3456_v36 = vpop.f32.mrb[5].mxu0 }
 0x25e   : > { %v1154_v39 = vpop.f32.mrb[6].mxu0 }
 0x25f   : > { %v1155_v40 = vadd.f32 %v1154_v39, %v1114_v37  ;;  %v3457_v41 = vpop.f32.mrb[7].mxu0  ;;  %v1158_v42 = vmax.f32 %v1152_v35, 0.0  ;;  %v828_v35 = vadd.f32 %v3039_v32, %v4816_v22  ;;  %v831_v39 = vadd.f32 %v3039_v32, %v4818_v24  ;;  %v3830_v22 = vld [vmem:[#allocation12 + $0x90] sm:$0xff]  }
 0x261   : > { %v1159_v43 = vmax.f32 %v1155_v40, 0.0 }
 0x263   : > { %v1160_v44 = vpack.c.bf16 %v1159_v43, %v1158_v42 }
 0x265   : > { %v1165_v46 = vrot.slane %v1160_v44, 7  ;;  %v1178_v47 = vshrl.u32 %v1160_v44, 16  ;;  %3475 = vmatmul.mubr.bf16.vlgmr.msra.gmra.mrb[8].mxu0 %v1160_v44  ;;  %v1181_v50 = vshll.u32 %v1160_v44, 16 }
 0x266   : > { %3295 = vmatpush3.bf16.msra.mxu0 %v3809_v59  ;;  %v3840_v59 = vld [vmem:[#allocation13 + $0x48] sm:$0xff]  }
 0x267   : > { %1167 = vst [vmem:[#allocation2] sm:$0xfe] %v1165_v46  ;;  %v1180_v49 = vrot.slane %v1178_v47, 7  ;;  %1193 = vst [vmem:[#allocation3 + $0x8] sm:$0x1] %v1165_v46  ;;  %3296 = vmatprep.subr.bf16.mxu0 %v3810_v61  ;;  %v3824_v46 = vld [vmem:[#allocation12 + $0x80] sm:$0xff]  }
 0x268   : > { %v3841_v61 = vld [vmem:[#allocation13 + $0x8] sm:$0xff]  }
 0x269   : > { %v1183_v52 = vor.u32 %v1181_v50, %v1180_v49  ;;  %v1190_v53 = vsel %vm4776_vm3, %v1180_v49, %v1189_v48  ;;  %v3827_v50 = vld [vmem:[#allocation12 + $0x88] sm:$0xff]  }
 0x26a   : > { %1191 = vst [vmem:[#allocation2 + $0x20] sm:$0x1] %v1190_v53  ;;  %3297 = vmatpush3.bf16.msra.mxu0 %v3812_v63  ;;  %v3832_v53 = vld [vmem:[#allocation12 + $0xa0] sm:$0xff]   ;;  %v3843_v63 = vld [vmem:[#allocation13 + $0x50] sm:$0xff]  }
 0x26b   : > { %v1187_v54 = vsel %vm4788_vm6, %v1183_v52, %v1186_v51  ;;  %3298 = vmatprep.subr.bf16.mxu0 %v3813_v0  ;;  %v3831_v52 = vld [vmem:[#allocation12 + $0x98] sm:$0xff]   ;;  %v3844_v0 = vld [vmem:[#allocation13 + $0x10] sm:$0xff]  }
 0x26c   : > { %1188 = vst [vmem:[#allocation2 + $0x8] sm:$0xff] %v1187_v54  ;;  %1428 = vmatprep.mubr.bf16.mxu1 %v1187_v54  ;;  %v3833_v54 = vld [vmem:[#allocation12 + $0xa8] sm:$0xff]  }
 0x26d   : > { %1609 = vst [vmem:[#allocation2 + $0x8] sm:$0x1] %v1607_v13  ;;  %v1911_v13 = vld [vmem:[#allocation3 + $0x18] sm:$0x2] }
 0x26e   : > { %v1194_v57 = vld [vmem:[#allocation2] sm:$0xff]  ;;  %3299 = vmatpush3.bf16.msra.mxu0 %v3815_v3  ;;  %v3851_v3 = vld [vmem:[#allocation13 + $0xa8] sm:$0xff]  }
 0x26f   : > { %1429 = vmatmul.mubr.bf16.vlgmr.msra.gmra.mrb[4].mxu1 %v1194_v57  ;;  %1599 = vst [vmem:[#allocation2] sm:$0x3] %v1598_v55  ;;  %3300 = vmatprep.subr.bf16.mxu0 %v3816_v4  ;;  %v3834_v55 = vld [vmem:[#allocation12 + $0xb0] sm:$0xff]   ;;  %v3836_v57 = vld [vmem:[#allocation13 + $0x80] sm:$0xff]   ;;  %v3846_v4 = vld [vmem:[#allocation13 + $0x58] sm:$0xff]  }
 0x270   : > { %3479 = vmatpush3.bf16.msra.mxu1 %v3804_v56  ;;  %3494 = vmatprep.mubr.msk.bf16.mxu1 %vm4291_vm0, %v4290_v2  ;;  %v3835_v56 = vld [vmem:[#allocation12 + $0xb8] sm:$0xff]  }
 0x271   : > { %3480 = vmatprep.subr.bf16.mxu1 %v4290_v2 }
 0x272   : > { %3301 = vmatpush3.bf16.msra.mxu0 %v3818_v6  ;;  %v3854_v6 = vld [vmem:[#allocation13 + $0xb0] sm:$0xff]  }
 0x273   : > { %3302 = vmatprep.subr.bf16.mxu0 %v3819_v7  ;;  %v3849_v7 = vld [vmem:[#allocation13 + $0x60] sm:$0xff]  }
 0x274   : > { %3481 = vmatpush3.bf16.msra.mxu1 %v3805_v58  ;;  %v3839_v58 = vld [vmem:[#allocation13 + $0x88] sm:$0xff]  }
 0x275   : > { %3482 = vmatprep.subr.bf16.mxu1 %v4290_v2 }
 0x276   : > { %3303 = vmatpush3.bf16.msra.mxu0 %v3821_v9  ;;  %v3857_v9 = vld [vmem:[#allocation13 + $0xb8] sm:$0xff]  }
 0x277   : > { %3304 = vmatprep.subr.bf16.mxu0 %v3822_v10  ;;  %v3852_v10 = vld [vmem:[#allocation13 + $0x68] sm:$0xff]  }
 0x278   : > { %3483 = vmatpush3.bf16.msra.mxu1 %v3806_v38  ;;  %v3837_v38 = vld [vmem:[#allocation13 + $0x40] sm:$0xff]  }
 0x279   : > { %3484 = vmatprep.subr.bf16.mxu1 %v4290_v2 }
 0x27a   : > { %3305 = vmatpush3.bf16.msra.mxu0 %v3823_v11  ;;  %v1904_v11 = vld [vmem:[#allocation3 + $0x18] sm:$0x3] }
 0x27b   : > { %3306 = vmatprep.subr.bf16.mxu0 %v3825_v14  ;;  %v1913_v14 = vrot.slane %v1911_v13, 1 }
 0x27c   : > { %3485 = vmatpush3.bf16.msra.mxu1 %v3808_v60  ;;  %v3842_v60 = vld [vmem:[#allocation13 + $0x90] sm:$0xff]  }
 0x27d   : > { %3486 = vmatprep.subr.bf16.mxu1 %v4290_v2 }
 0x27e   : > { %3307 = vmatpush3.bf16.msra.mxu0 %v3826_v15  ;;  %v3855_v15 = vld [vmem:[#allocation13 + $0x70] sm:$0xff]  }
 0x27f   : > { %3308 = vmatprep.subr.bf16.mxu0 %v3828_v16  ;;  %v3856_v16 = vld [vmem:[#allocation13 + $0x30] sm:$0xff]  }
 0x280   : > { %3487 = vmatpush3.bf16.msra.mxu1 %v3811_v62  ;;  %v3845_v62 = vld [vmem:[#allocation13 + $0x98] sm:$0xff]  }
 0x281   : > { %3488 = vmatprep.subr.bf16.mxu1 %v4290_v2 }
 0x282   : > { %3309 = vmatpush3.bf16.msra.mxu0 %v3829_v17  ;;  %v3858_v17 = vld [vmem:[#allocation13 + $0x78] sm:$0xff]  }
 0x283   : > { %3325 = vmatprep.subr.bf16.mxu0 %v3837_v38  ;;  %v3867_v38 = vld [vmem:[#allocation16 + $0x50] sm:$0xff]  }
 0x284   : > { %3489 = vmatpush3.bf16.msra.mxu1 %v3814_v1  ;;  %v3848_v1 = vld [vmem:[#allocation13 + $0xa0] sm:$0xff]  }
 0x285   : > { %3490 = vmatprep.subr.bf16.mxu1 %v4290_v2 }
 0x288   : > { %3491 = vmatpush3.bf16.msra.mxu1 %v3817_v5  ;;  %v3847_v5 = vld [vmem:[#allocation13 + $0x18] sm:$0xff]  }
 0x289   : > { %3492 = vmatprep.subr.bf16.mxu1 %v4290_v2 }
 0x28c   : > { %3493 = vmatpush3.bf16.msra.mxu1 %v3820_v8  ;;  %v3850_v8 = vld [vmem:[#allocation13 + $0x20] sm:$0xff]  }
 0x28d   : > { %3498 = vmatprep.subr.bf16.mxu1 %v4290_v2 }
 0x338   : > { %v1471_v18 = vpop.f32.mrb[8].mxu0 }
 0x339   : > { %v3476_v19 = vpop.f32.mrb[9].mxu0 }
 0x33a   : > { %v1474_v20 = vpop.f32.mrb[10].mxu0 }
 0x33b   : > { %v3477_v21 = vpop.f32.mrb[11].mxu0 }
 0x342   : > { %v3270_v23 = vpop.f32.mrb[4].mxu1 }
 0x343   : > { %v3271_v26 = vpop.f32.mrb[5].mxu1 }
 0x344   : > { %v3272_v27 = vadd.f32 %v3271_v26, %v3270_v23  ;;  %v3273_v28 = vpop.f32.mrb[6].mxu1 }
 0x345   : > { %v3274_v29 = vpop.f32.mrb[7].mxu1 }
 0x346   : > { %v1431_v30 = vadd.f32 %v3272_v27, %v3075_v25  ;;  %v3275_v31 = vadd.f32 %v3274_v29, %v3273_v28 }
 0x348   : > { %v1472_v33 = vadd.f32 %v1471_v18, %v1431_v30  ;;  %v1434_v34 = vadd.f32 %v3275_v31, %v3075_v25  ;;  %v3859_v18 = vld [vmem:[#allocation13 + $0x38] sm:$0xff]   ;;  %v3109_v31 = vld [vmem:[%s5060_s3] ss:$0 sm:$0xff] }
 0x34a   : > { %v1478_v36 = vmax.f32 %v1472_v33, 0.0  ;;  %v1475_v37 = vadd.f32 %v1474_v20, %v1434_v34 }
 0x34c   : > { %v1480_v40 = vadd.f32 %v1478_v36, %v828_v35  ;;  %v1479_v41 = vmax.f32 %v1475_v37, 0.0 }
 0x34e   : > { %v1481_v42 = vadd.f32 %v1479_v41, %v831_v39  ;;  %v1482_v43 = vmax.f32 %v1480_v40, 0.0 }
 0x350   : > { %v1483_v44 = vmax.f32 %v1481_v42, 0.0 }
 0x352   : > { %v1484_v47 = vpack.c.bf16 %v1483_v44, %v1482_v43  ;;  %v3860_v43 = vld [vmem:[#allocation16 + $0x80] sm:$0xff]  }
 0x354   : > { %3495 = vmatmul.mubr.bf16.vlgmr.msra.gmra.mrb[8].mxu1 %v1484_v47  ;;  %v1601_v48 = vrot.slane %v1484_v47, 6  ;;  %v1610_v49 = vrot.slane %v1484_v47, 7 }
 0x355   : > { %3499 = vmatpush3.bf16.msra.mxu1 %v3824_v46  ;;  %3514 = vmatprep.mubr.msk.bf16.mxu1 %vm4291_vm0, %v4290_v2 }
 0x356   : > { %1603 = vst [vmem:[#allocation2] sm:$0xfc] %v1601_v48  ;;  %1612 = vst [vmem:[#allocation2 + $0x8] sm:$0xfe] %v1610_v49  ;;  %3500 = vmatprep.subr.bf16.mxu1 %v4290_v2 }
 0x357   : > { %1615 = vst [vmem:[#allocation3 + $0x10] sm:$0x3] %v1601_v48  ;;  %1613 = vst [vmem:[#allocation2 + $0x20] sm:$0x1] %v1610_v49  ;;  %v2221_v48 = vld [vmem:[#allocation3 + $0x20] sm:$0xc] }
 0x358   : > { %v2223_v49 = vrot.slane %v2221_v48, 2 }
 0x359   : > { %3501 = vmatpush3.bf16.msra.mxu1 %v3827_v50  ;;  %v2214_v50 = vld [vmem:[#allocation3 + $0x20] sm:$0xf] }
 0x35a   : > { %3502 = vmatprep.subr.bf16.mxu1 %v4290_v2 }
 0x35d   : > { %3503 = vmatpush3.bf16.msra.mxu1 %v3830_v22  ;;  %v1617_v24 = vld [vmem:[#allocation2 + $0x8] sm:$0xff]  ;;  %v1616_v51 = vld [vmem:[#allocation2] sm:$0xff] }
 0x35e   : > { %1850 = vmatprep.mubr.bf16.mxu0 %v1617_v24  ;;  %3504 = vmatprep.subr.bf16.mxu1 %v4290_v2  ;;  %1905 = vst [vmem:[#allocation2] sm:$0x3] %v1904_v11  ;;  %1915 = vst [vmem:[#allocation2 + $0x8] sm:$0x1] %v1913_v14 }
 0x35f   : > { %1851 = vmatmul.mubr.bf16.vlgmr.msra.gmra.mrb[12].mxu0 %v1616_v51  ;;  %v3861_v51 = vld [vmem:[#allocation16 + $0x40] sm:$0xff]  }
 0x360   : > { %3326 = vmatpush3.bf16.msra.mxu0 %v3838_v45  ;;  %v3868_v45 = vld [vmem:[#allocation16 + $0x10] sm:$0xff]  }
 0x361   : > { %3505 = vmatpush3.bf16.msra.mxu1 %v3831_v52  ;;  %3327 = vmatprep.subr.bf16.mxu0 %v3840_v59  ;;  %v3863_v52 = vld [vmem:[#allocation16 + $0x88] sm:$0xff]  }
 0x362   : > { %3506 = vmatprep.subr.bf16.mxu1 %v4290_v2  ;;  %v3875_v59 = vld [vmem:[#allocation16 + $0xa8] sm:$0xff]  }
 0x364   : > { %3328 = vmatpush3.bf16.msra.mxu0 %v3841_v61  ;;  %v3871_v61 = vld [vmem:[#allocation16 + $0x18] sm:$0xff]  }
 0x365   : > { %3507 = vmatpush3.bf16.msra.mxu1 %v3832_v53  ;;  %3329 = vmatprep.subr.bf16.mxu0 %v3843_v63  ;;  %v3862_v53 = vld [vmem:[#allocation16] sm:$0xff]  }
 0x366   : > { %3508 = vmatprep.subr.bf16.mxu1 %v4290_v2  ;;  %v3873_v63 = vld [vmem:[#allocation16 + $0x60] sm:$0xff]  }
 0x368   : > { %3330 = vmatpush3.bf16.msra.mxu0 %v3844_v0  ;;  %v3874_v0 = vld [vmem:[#allocation16 + $0x20] sm:$0xff]  }
 0x369   : > { %3509 = vmatpush3.bf16.msra.mxu1 %v3833_v54  ;;  %3331 = vmatprep.subr.bf16.mxu0 %v3846_v4  ;;  %v3866_v54 = vld [vmem:[#allocation16 + $0x90] sm:$0xff]   ;;  %v3877_v4 = vld [vmem:[#allocation16 + $0x28] sm:$0xff]  }
 0x36a   : > { %3510 = vmatprep.subr.bf16.mxu1 %v4290_v2 }
 0x36c   : > { %3332 = vmatpush3.bf16.msra.mxu0 %v3847_v5  ;;  %v3879_v5 = vld [vmem:[#allocation16 + $0x70] sm:$0xff]  }
 0x36d   : > { %3511 = vmatpush3.bf16.msra.mxu1 %v3834_v55  ;;  %3333 = vmatprep.subr.bf16.mxu0 %v3849_v7  ;;  %v3869_v55 = vld [vmem:[#allocation16 + $0x98] sm:$0xff]  }
 0x36e   : > { %3512 = vmatprep.subr.bf16.mxu1 %v4290_v2  ;;  %v3882_v7 = vld [vmem:[#allocation16 + $0x78] sm:$0xff]  }
 0x370   : > { %3334 = vmatpush3.bf16.msra.mxu0 %v3850_v8  ;;  %v3883_v8 = vld [vmem:[#allocation16 + $0x38] sm:$0xff]  }
 0x371   : > { %3513 = vmatpush3.bf16.msra.mxu1 %v3835_v56  ;;  %3335 = vmatprep.subr.bf16.mxu0 %v3852_v10  ;;  %v3864_v56 = vld [vmem:[#allocation16 + $0x48] sm:$0xff]  }
 0x372   : > { %3518 = vmatprep.subr.bf16.mxu1 %v4290_v2 }
 0x374   : > { %3515 = vmatmul.mubr.bf16.vlgmr.msra.gmra.mrb[12].mxu1 %v1484_v47  ;;  %3336 = vmatpush3.bf16.msra.mxu0 %v3853_v12 }
 0x375   : > { %3534 = vmatprep.mubr.msk.bf16.mxu1 %vm4291_vm0, %v4290_v2  ;;  %3519 = vmatpush3.bf16.msra.mxu1 %v3836_v57  ;;  %v3865_v57 = vld [vmem:[#allocation16 + $0x8] sm:$0xff]  }
 0x376   : > { %3520 = vmatprep.subr.bf16.mxu1 %v4290_v2  ;;  %3337 = vmatprep.subr.bf16.mxu0 %v3855_v15  ;;  %v3134_v15 = vld [vmem:[%s5061_s16] ss:$0 sm:$0xff]  ;;  %s3210_s16 = sshll.u32 %s5065_s1, 1 }
 0x377   : > { %s2843_s12 = sadd.s32 %s3579_s19, %s3210_s16 }
 0x378   : > { %3338 = vmatpush3.bf16.msra.mxu0 %v3856_v16  ;;  %s3211_s21 = sshll.u32 %s2843_s12, 7 }
 0x379   : > { %3521 = vmatpush3.bf16.msra.mxu1 %v3839_v58  ;;  %3339 = vmatprep.subr.bf16.mxu0 %v3858_v17  ;;  %v3872_v58 = vld [vmem:[#allocation16 + $0xa0] sm:$0xff]  }
 0x37a   : > { %3522 = vmatprep.subr.bf16.mxu1 %v4290_v2 }
 0x37c   : > { %3340 = vmatpush3.bf16.msra.mxu0 %v3859_v18 }
 0x37d   : > { %3523 = vmatpush3.bf16.msra.mxu1 %v3842_v60  ;;  %3356 = vmatprep.subr.bf16.mxu0 %v3861_v51  ;;  %v3870_v60 = vld [vmem:[#allocation16 + $0x58] sm:$0xff]   ;;  %v3896_v51 = vld [vmem:[#allocation18 + $0xa0] sm:$0xff]  }
 0x37e   : > { %3524 = vmatprep.subr.bf16.mxu1 %v4290_v2 }
 0x381   : > { %3525 = vmatpush3.bf16.msra.mxu1 %v3845_v62  ;;  %v3878_v62 = vld [vmem:[#allocation16 + $0xb0] sm:$0xff]  }
 0x382   : > { %3526 = vmatprep.subr.bf16.mxu1 %v4290_v2 }
 0x385   : > { %3527 = vmatpush3.bf16.msra.mxu1 %v3848_v1  ;;  %v3881_v1 = vld [vmem:[#allocation16 + $0xb8] sm:$0xff]  }
 0x386   : > { %3528 = vmatprep.subr.bf16.mxu1 %v4290_v2 }
 0x389   : > { %3529 = vmatpush3.bf16.msra.mxu1 %v3851_v3  ;;  %v3876_v3 = vld [vmem:[#allocation16 + $0x68] sm:$0xff]  }
 0x38a   : > { %3530 = vmatprep.subr.bf16.mxu1 %v4290_v2 }
 0x38d   : > { %3531 = vmatpush3.bf16.msra.mxu1 %v3854_v6  ;;  %v3880_v6 = vld [vmem:[#allocation16 + $0x30] sm:$0xff]  }
 0x38e   : > { %3532 = vmatprep.subr.bf16.mxu1 %v4290_v2 }
 0x391   : > { %3533 = vmatpush3.bf16.msra.mxu1 %v3857_v9  ;;  %v3885_v9 = vld [vmem:[#allocation18 + $0x40] sm:$0xff]  }
 0x392   : > { %3538 = vmatprep.subr.bf16.mxu1 %v4290_v2 }
 0x427   : > { %v4865_v19 = vpop.f32.mrb[8].mxu1 }
 0x428   : > { %v3496_v20 = vpop.f32.mrb[9].mxu1 }
 0x429   : > { %v4867_v21 = vpop.f32.mrb[10].mxu1 }
 0x42a   : > { %v3497_v23 = vpop.f32.mrb[11].mxu1 }
 0x432   : > { %v3310_v25 = vpop.f32.mrb[12].mxu0 }
 0x433   : > { %v3311_v26 = vpop.f32.mrb[13].mxu0 }
 0x434   : > { %v3312_v27 = vadd.f32 %v3311_v26, %v3310_v25  ;;  %v3313_v28 = vpop.f32.mrb[14].mxu0  ;;  %v3100_v26 = vld [vmem:[%s5062_s10] ss:$0 sm:$0xff]  ;;  %s2846_s10 = sshll.u32 %s4756_s7, 4  ;;  %s4927_s10 = int_to_ptr.vmem [resolvable:$true] %s2846_s10 }
 0x435   : > { %v3314_v29 = vpop.f32.mrb[15].mxu0  ;;  %s4162_s3 = scalar_lea.vmem %s4927_s10, 256 }
 0x436   : > { %v3315_v30 = vadd.f32 %v3314_v29, %v3313_v28  ;;  %v1853_v32 = vadd.f32 %v3312_v27, %v3109_v31  ;;  %v1591_v29 = vadd.f32 %v3100_v26, %v4865_v19  ;;  %p4163_p10 = scmp.ne.s32.totalorder %s4927_s10, %s4162_s3 }
 0x438   : > { %v1856_v36 = vadd.f32 %v3315_v30, %v3109_v31  ;;  %p4164_p5 = pnand %p4163_p10, %p5069_p7 }
 0x43a   : > { %p4165_p6 = pneg %p4164_p5 }
 0x447   : > { %v1893_v33 = vpop.f32.mrb[12].mxu1 }
 0x448   : > { %v1894_v34 = vadd.f32 %v1893_v33, %v1853_v32  ;;  %v3516_v35 = vpop.f32.mrb[13].mxu1  ;;  %v1594_v32 = vadd.f32 %v3100_v26, %v4867_v21  ;;  %v3887_v21 = vld [vmem:[#allocation18 + $0x88] sm:$0xff]  }
 0x449   : > { %v1896_v37 = vpop.f32.mrb[14].mxu1 }
 0x44a   : > { %v1897_v39 = vadd.f32 %v1896_v37, %v1856_v36  ;;  %v3517_v40 = vpop.f32.mrb[15].mxu1  ;;  %v1900_v41 = vmax.f32 %v1894_v34, 0.0 }
 0x44c   : > { %v1901_v42 = vmax.f32 %v1897_v39, 0.0  ;;  %v3884_v39 = vld [vmem:[#allocation18 + $0x80] sm:$0xff]  }
 0x44e   : > { %v1902_v44 = vpack.c.bf16 %v1901_v42, %v1900_v41  ;;  %v2527_v42 = vld [vmem:[#allocation3 + $0x28] sm:$0xc] }
 0x450   : > { %v1907_v46 = vrot.slane %v1902_v44, 6  ;;  %v1916_v47 = vrot.slane %v1902_v44, 7  ;;  %3535 = vmatmul.mubr.bf16.vlgmr.msra.gmra.mrb[16].mxu1 %v1902_v44  ;;  %v2520_v44 = vld [vmem:[#allocation3 + $0x28] sm:$0xf] }
 0x451   : > { %3539 = vmatpush3.bf16.msra.mxu1 %v3860_v43  ;;  %3554 = vmatprep.mubr.msk.bf16.mxu1 %vm4291_vm0, %v4290_v2  ;;  %v2529_v43 = vrot.slane %v2527_v42, 2 }
 0x452   : > { %1909 = vst [vmem:[#allocation2] sm:$0xfc] %v1907_v46  ;;  %1918 = vst [vmem:[#allocation2 + $0x8] sm:$0xfe] %v1916_v47  ;;  %3540 = vmatprep.subr.bf16.mxu1 %v4290_v2 }
 0x453   : > { %1919 = vst [vmem:[#allocation2 + $0x20] sm:$0x1] %v1916_v47  ;;  %1921 = vst [vmem:[#allocation3 + $0x18] sm:$0x3] %v1907_v46  ;;  %v3886_v46 = vld [vmem:[#allocation18] sm:$0xff]  }
 0x455   : > { %3541 = vmatpush3.bf16.msra.mxu1 %v3863_v52  ;;  %v3891_v52 = vld [vmem:[#allocation18 + $0x50] sm:$0xff]  }
 0x456   : > { %3542 = vmatprep.subr.bf16.mxu1 %v4290_v2 }
 0x459   : > { %v1923_v22 = vld [vmem:[#allocation2 + $0x8] sm:$0xff]  ;;  %v1922_v24 = vld [vmem:[#allocation2] sm:$0xff]  ;;  %3543 = vmatpush3.bf16.msra.mxu1 %v3866_v54  ;;  %v3899_v54 = vld [vmem:[#allocation18 + $0xa8] sm:$0xff]  }
 0x45a   : > { %2156 = vmatprep.mubr.bf16.mxu0 %v1923_v22  ;;  %2225 = vst [vmem:[#allocation2 + $0x8] sm:$0x3] %v2223_v49  ;;  %2215 = vst [vmem:[#allocation2] sm:$0xf] %v2214_v50  ;;  %3544 = vmatprep.subr.bf16.mxu1 %v4290_v2  ;;  %v3888_v49 = vld [vmem:[#allocation18 + $0x48] sm:$0xff]   ;;  %v3890_v50 = vld [vmem:[#allocation18 + $0x90] sm:$0xff]  }
 0x45b   : > { %2157 = vmatmul.mubr.bf16.vlgmr.msra.gmra.mrb[16].mxu0 %v1922_v24  ;;  %v3889_v22 = vld [vmem:[#allocation18 + $0x8] sm:$0xff]   ;;  %v3893_v24 = vld [vmem:[#allocation18 + $0x98] sm:$0xff]  }
 0x45c   : > { %3357 = vmatpush3.bf16.msra.mxu0 %v3862_v53  ;;  %v3892_v53 = vld [vmem:[#allocation18 + $0x10] sm:$0xff]  }
 0x45d   : > { %3545 = vmatpush3.bf16.msra.mxu1 %v3869_v55  ;;  %3358 = vmatprep.subr.bf16.mxu0 %v3864_v56  ;;  %v3894_v55 = vld [vmem:[#allocation18 + $0x58] sm:$0xff]  }
 0x45e   : > { %3546 = vmatprep.subr.bf16.mxu1 %v4290_v2  ;;  %v3895_v56 = vld [vmem:[#allocation18 + $0x18] sm:$0xff]  }
 0x460   : > { %3359 = vmatpush3.bf16.msra.mxu0 %v3865_v57  ;;  %v3902_v57 = vld [vmem:[#allocation18 + $0xb0] sm:$0xff]  }
 0x461   : > { %3547 = vmatpush3.bf16.msra.mxu1 %v3872_v58  ;;  %3360 = vmatprep.subr.bf16.mxu0 %v3867_v38  ;;  %v3897_v58 = vld [vmem:[#allocation18 + $0x60] sm:$0xff]  }
 0x462   : > { %3548 = vmatprep.subr.bf16.mxu1 %v4290_v2  ;;  %v3898_v38 = vld [vmem:[#allocation18 + $0x20] sm:$0xff]  }
 0x464   : > { %3361 = vmatpush3.bf16.msra.mxu0 %v3868_v45  ;;  %v3905_v45 = vld [vmem:[#allocation18 + $0xb8] sm:$0xff]  }
 0x465   : > { %3549 = vmatpush3.bf16.msra.mxu1 %v3875_v59  ;;  %3362 = vmatprep.subr.bf16.mxu0 %v3870_v60  ;;  %v3900_v59 = vld [vmem:[#allocation18 + $0x68] sm:$0xff]  }
 0x466   : > { %3550 = vmatprep.subr.bf16.mxu1 %v4290_v2  ;;  %v3901_v60 = vld [vmem:[#allocation18 + $0x28] sm:$0xff]  }
 0x468   : > { %3363 = vmatpush3.bf16.msra.mxu0 %v3871_v61  ;;  %v3903_v61 = vld [vmem:[#allocation18 + $0x70] sm:$0xff]  }
 0x469   : > { %3551 = vmatpush3.bf16.msra.mxu1 %v3878_v62  ;;  %3364 = vmatprep.subr.bf16.mxu0 %v3873_v63  ;;  %v3904_v62 = vld [vmem:[#allocation18 + $0x30] sm:$0xff]   ;;  %v3906_v63 = vld [vmem:[#allocation18 + $0x78] sm:$0xff]  }
 0x46a   : > { %3552 = vmatprep.subr.bf16.mxu1 %v4290_v2 }
 0x46c   : > { %3365 = vmatpush3.bf16.msra.mxu0 %v3874_v0  ;;  %v3907_v0 = vld [vmem:[#allocation18 + $0x38] sm:$0xff]  }
 0x46d   : > { %3553 = vmatpush3.bf16.msra.mxu1 %v3881_v1  ;;  %3366 = vmatprep.subr.bf16.mxu0 %v3876_v3 }
 0x46e   : > { %3558 = vmatprep.subr.bf16.mxu1 %v4290_v2 }
 0x470   : > { %3367 = vmatpush3.bf16.msra.mxu0 %v3877_v4 }
 0x471   : > { %3368 = vmatprep.subr.bf16.mxu0 %v3879_v5 }
 0x474   : > { %3369 = vmatpush3.bf16.msra.mxu0 %v3880_v6  ;;  %v3159_v6 = vld [vmem:[%s5063_s28] ss:$0 sm:$0xff]  ;;  %s5067_s28 = sld [smem:[#allocation43_spill]] }
 0x475   : > { %3370 = vmatprep.subr.bf16.mxu0 %v3882_v7 }
 0x478   : > { %3371 = vmatpush3.bf16.msra.mxu0 %v3883_v8 }
 0x479   : > { %3387 = vmatprep.subr.bf16.mxu0 %v3885_v9 }
 0x47a   : > { %s5068_s4 = smov %s5067_s28  ;;  %s4925_s1 = scalar_lea.hbm %s5067_s28, %s3211_s21 }
 0x523   : > { %v2199_v10 = vpop.f32.mrb[16].mxu1 }
 0x524   : > { %v3536_v11 = vpop.f32.mrb[17].mxu1 }
 0x525   : > { %v2202_v12 = vpop.f32.mrb[18].mxu1 }
 0x526   : > { %v3537_v13 = vpop.f32.mrb[19].mxu1 }
 0x52e   : > { %v3341_v14 = vpop.f32.mrb[16].mxu0 }
 0x52f   : > { %v3342_v16 = vpop.f32.mrb[17].mxu0 }
 0x530   : > { %v3343_v17 = vadd.f32 %v3342_v16, %v3341_v14  ;;  %v3344_v18 = vpop.f32.mrb[18].mxu0 }
 0x531   : > { %v3345_v20 = vpop.f32.mrb[19].mxu0 }
 0x532   : > { %v2159_v23 = vadd.f32 %v3343_v17, %v3134_v15  ;;  %v3346_v25 = vadd.f32 %v3345_v20, %v3344_v18 }
 0x534   : > { %v2200_v27 = vadd.f32 %v2199_v10, %v2159_v23  ;;  %v2162_v28 = vadd.f32 %v3346_v25, %v3134_v15 }
 0x536   : > { %v2206_v30 = vmax.f32 %v2200_v27, 0.0  ;;  %v2203_v31 = vadd.f32 %v2202_v12, %v2162_v28 }
 0x538   : > { %v4890_v33 = vadd.f32 %v2206_v30, %v1591_v29  ;;  %v2207_v34 = vmax.f32 %v2203_v31, 0.0 }
 0x53a   : > { %v4892_v35 = vadd.f32 %v2207_v34, %v1594_v32  ;;  %v2210_v36 = vmax.f32 %v4890_v33, 0.0  ;;  %v3184_v32 = vld [vmem:[%s5066_s23] ss:$0 sm:$0xff]  ;;  %s4292_s23 = smov [#allocation19]  }
 0x53b   : > { %s4166_s19 = sshll.u32 %s4292_s23, 4  ;;  %s4167_s19 = int_to_ptr.vmem [resolvable:$false] %s4166_s19 }
 0x53c   : > { %v2211_v37 = vmax.f32 %v4892_v35, 0.0  ;;  %s4168_s16 = scalar_lea.vmem %s4167_s19, 512  ;;  %p4169_p8 = scmp.lt.s32.totalorder %s4927_s10, %s4167_s19 }
 0x53d   : > { %p4170_p9 = scmp.lt.s32.totalorder %s4168_s16, %s4162_s3 }
 0x53e   : > { %v2212_v40 = vpack.c.bf16 %v2211_v37, %v2210_v36 }
 0x53f   : > { %p4171_p1 = por %p4170_p9, %p4169_p8 }
 0x540   : > { %v2217_v19 = vrot.slane %v2212_v40, 4  ;;  %v2226_v41 = vrot.slane %v2212_v40, 6  ;;  %3555 = vmatmul.mubr.bf16.vlgmr.msra.gmra.mrb[20].mxu1 %v2212_v40 }
 0x541   : > { %3559 = vmatpush3.bf16.msra.mxu1 %v3884_v39  ;;  %3574 = vmatprep.mubr.msk.bf16.mxu1 %vm4291_vm0, %v4290_v2  ;;  %p4172_p11 = pnand %p4171_p1, %p4165_p6 }
 0x542   : > { %2219 = vst [vmem:[#allocation2 + $0x18] ss:$-20 sps:$4 sm:$0xff] %v2217_v19   ;;  %2228 = vst [vmem:[#allocation2 + $0x8] sm:$0xfc] %v2226_v41  ;;  %3560 = vmatprep.subr.bf16.mxu1 %v4290_v2 }
 0x543   : > { %2229 = vst [vmem:[#allocation2 + $0x20] sm:$0x3] %v2226_v41  ;;  %2231 = vst [vmem:[#allocation3 + $0x20] sm:$0xf] %v2217_v19 }
 0x545   : > { %3561 = vmatpush3.bf16.msra.mxu1 %v3887_v21 }
 0x546   : > { %3562 = vmatprep.subr.bf16.mxu1 %v4290_v2 }
 0x549   : > { %v2233_v47 = vld [vmem:[#allocation2 + $0x8] sm:$0xff]  ;;  %v2232_v48 = vld [vmem:[#allocation2] sm:$0xff]  ;;  %3563 = vmatpush3.bf16.msra.mxu1 %v3890_v50 }
 0x54a   : > { %2466 = vmatprep.mubr.bf16.mxu0 %v2233_v47  ;;  %2531 = vst [vmem:[#allocation2 + $0x8] sm:$0x3] %v2529_v43  ;;  %2521 = vst [vmem:[#allocation2] sm:$0xf] %v2520_v44  ;;  %3564 = vmatprep.subr.bf16.mxu1 %v4290_v2 }
 0x54b   : > { %2467 = vmatmul.mubr.bf16.vlgmr.msra.gmra.mrb[20].mxu0 %v2232_v48 }
 0x54c   : > { %3388 = vmatpush3.bf16.msra.mxu0 %v3886_v46 }
 0x54d   : > { %3389 = vmatprep.subr.bf16.mxu0 %v3888_v49  ;;  %3565 = vmatpush3.bf16.msra.mxu1 %v3893_v24 }
 0x54e   : > { %3566 = vmatprep.subr.bf16.mxu1 %v4290_v2 }
 0x550   : > { %3390 = vmatpush3.bf16.msra.mxu0 %v3889_v22 }
 0x551   : > { %3567 = vmatpush3.bf16.msra.mxu1 %v3896_v51  ;;  %3391 = vmatprep.subr.bf16.mxu0 %v3891_v52 }
 0x552   : > { %3568 = vmatprep.subr.bf16.mxu1 %v4290_v2 }
 0x554   : > { %3392 = vmatpush3.bf16.msra.mxu0 %v3892_v53 }
 0x555   : > { %3569 = vmatpush3.bf16.msra.mxu1 %v3899_v54  ;;  %3393 = vmatprep.subr.bf16.mxu0 %v3894_v55 }
 0x556   : > { %3570 = vmatprep.subr.bf16.mxu1 %v4290_v2 }
 0x558   : > { %3394 = vmatpush3.bf16.msra.mxu0 %v3895_v56 }
 0x559   : > { %3571 = vmatpush3.bf16.msra.mxu1 %v3902_v57  ;;  %3395 = vmatprep.subr.bf16.mxu0 %v3897_v58 }
 0x55a   : > { %3572 = vmatprep.subr.bf16.mxu1 %v4290_v2 }
 0x55c   : > { %3396 = vmatpush3.bf16.msra.mxu0 %v3898_v38 }
 0x55d   : > { %3573 = vmatpush3.bf16.msra.mxu1 %v3905_v45  ;;  %3397 = vmatprep.subr.bf16.mxu0 %v3900_v59 }
 0x560   : > { %3398 = vmatpush3.bf16.msra.mxu0 %v3901_v60 }
 0x561   : > { %3399 = vmatprep.subr.bf16.mxu0 %v3903_v61 }
 0x564   : > { %3400 = vmatpush3.bf16.msra.mxu0 %v3904_v62 }
 0x565   : > { %3401 = vmatprep.subr.bf16.mxu0 %v3906_v63 }
 0x568   : > { %3402 = vmatpush3.bf16.msra.mxu0 %v3907_v0 }
 0x613   : > { %v2509_v1 = vpop.f32.mrb[20].mxu1 }
 0x614   : > { %v3556_v3 = vpop.f32.mrb[21].mxu1 }
 0x615   : > { %v2512_v4 = vpop.f32.mrb[22].mxu1 }
 0x616   : > { %v3557_v2 = vpop.f32.mrb[23].mxu1 }
 0x61e   : > { %v3372_v5 = vpop.f32.mrb[20].mxu0 }
 0x61f   : > { %v3373_v7 = vpop.f32.mrb[21].mxu0 }
 0x620   : > { %v3374_v8 = vadd.f32 %v3373_v7, %v3372_v5  ;;  %v3375_v9 = vpop.f32.mrb[22].mxu0 }
 0x621   : > { %v3376_v10 = vpop.f32.mrb[23].mxu0 }
 0x622   : > { %v2469_v11 = vadd.f32 %v3374_v8, %v3159_v6  ;;  %v3377_v12 = vadd.f32 %v3376_v10, %v3375_v9 }
 0x624   : > { %v2510_v13 = vadd.f32 %v2509_v1, %v2469_v11  ;;  %v2472_v14 = vadd.f32 %v3377_v12, %v3159_v6 }
 0x626   : > { %v2513_v15 = vadd.f32 %v2512_v4, %v2472_v14  ;;  %v2516_v16 = vmax.f32 %v2510_v13, 0.0 }
 0x628   : > { %v2517_v17 = vmax.f32 %v2513_v15, 0.0 }
 0x62a   : > { %v2518_v18 = vpack.c.bf16 %v2517_v17, %v2516_v16 }
 0x62c   : > { %v2523_v20 = vrot.slane %v2518_v18, 4  ;;  %v2532_v23 = vrot.slane %v2518_v18, 6  ;;  %3575 = vmatmul.mubr.bf16.vlgmr.msra.gmra.mrb[24].mxu1 %v2518_v18 }
 0x62e   : > { %2526 = vst [vmem:[#allocation2 + $0x18] ss:$-20 sps:$4 sm:$0xff] %v2523_v20   ;;  %2534 = vst [vmem:[#allocation2 + $0x8] sm:$0xfc] %v2532_v23 }
 0x62f   : > { %2535 = vst [vmem:[#allocation2 + $0x20] sm:$0x3] %v2532_v23  ;;  %2537 = vst [vmem:[#allocation3 + $0x28] sm:$0xf] %v2523_v20 }
 0x635   : > { %v2539_v25 = vld [vmem:[#allocation2 + $0x8] sm:$0xff]  ;;  %v2538_v26 = vld [vmem:[#allocation2] sm:$0xff] }
 0x636   : > { %2772 = vmatprep.mubr.bf16.mxu0 %v2539_v25 }
 0x637   : > { %2773 = vmatmul.mubr.bf16.vlgmr.msra.gmra.mrb[24].mxu0 %v2538_v26 }
 0x6ff   : > { %v2815_v27 = vpop.f32.mrb[24].mxu1 }
 0x700   : > { %v3576_v28 = vpop.f32.mrb[25].mxu1 }
 0x701   : > { %v2818_v29 = vpop.f32.mrb[26].mxu1 }
 0x702   : > { %v3577_v30 = vpop.f32.mrb[27].mxu1 }
 0x70a   : > { %v3403_v31 = vpop.f32.mrb[24].mxu0 }
 0x70b   : > { %v3404_v34 = vpop.f32.mrb[25].mxu0 }
 0x70c   : > { %v3405_v39 = vadd.f32 %v3404_v34, %v3403_v31  ;;  %v3406_v40 = vpop.f32.mrb[26].mxu0 }
 0x70d   : > { %v3407_v19 = vpop.f32.mrb[27].mxu0 }
 0x70e   : > { %v2775_v41 = vadd.f32 %v3405_v39, %v3184_v32  ;;  %v3408_v21 = vadd.f32 %v3407_v19, %v3406_v40 }
 0x710   : > { %v2816_v42 = vadd.f32 %v2815_v27, %v2775_v41  ;;  %v2778_v43 = vadd.f32 %v3408_v21, %v3184_v32 }
 0x712   : > { %v2822_v44 = vmax.f32 %v2816_v42, 0.0  ;;  %v2819_v46 = vadd.f32 %v2818_v29, %v2778_v43 }
 0x714   : > { %v2824_v47 = vadd.f32 %v2822_v44, %v2210_v36  ;;  %v2823_v48 = vmax.f32 %v2819_v46, 0.0 }
 0x716   : > { %v2826_v49 = vmax.f32 %v2824_v47, 0.0  ;;  %v2825_v50 = vadd.f32 %v2823_v48, %v2211_v37 }
 0x718   : > { %2828 = vst [vmem:[%s4756_s7] sm:$0xff] %v2826_v49  ;;  %v2827_v33 = vmax.f32 %v2825_v50, 0.0 }
 0x71a   : > { %2829 = vst [vmem:[%s4756_s7 + $0x8] sm:$0xff] %v2827_v33 }
 0x71b   : > { %4175 = shalt.err (!%p4172_p11)
}
 0x71c   : > { %s4176_s7 = scalar_lea.hbm %s4925_s1, 256  ;;  %s4180_s5 = scalar_lea.hbm %s5068_s4, 1536 }
 0x71d   : > { %p4177_p12 = scmp.ne.s32.totalorder %s4925_s1, %s4176_s7  ;;  %p4181_p3 = scmp.lt.u32.totalorder %s4925_s1, %s5068_s4 }
 0x71e   : > { %p4182_p4 = scmp.lt.u32.totalorder %s4180_s5, %s4176_s7  ;;  %p4184_p10 = scmp.lt.u32.totalorder %s4176_s7, %s4925_s1 }
 0x71f   : > { %p4178_p13 = pnand %p4177_p12, %p5069_p7 }
 0x720   : > { %p4183_p2 = por %p4182_p4, %p4181_p3 }
 0x721   : > { %p4179_p0 = pneg %p4178_p13 }
 0x722   : > { %p4185_p5 = por %p4184_p10, %p4183_p2 }
 0x724   : > { %p4186_p6 = pnand %p4185_p5, %p4179_p0 }
 0x726   : > { %4189 = shalt.err (!%p4186_p6)
}
 0x727   : > { %s4293_s3 = smov 128   ;;  %s4294_s23 = smov 8  }
 0x728   : > { %3614 = dma.vmem_to_hbm [thread:$0]  (%p5069_p7), %s4927_s10, 256, %s4925_s1, %s2831_s8, %s4293_s3, %s4293_s3, %s4294_s23  }
 0x729 PF: > { %p3666_p8 = scmp.ge.s32.totalorder %s4276_s30, 2  ;;  %s2861_s19 = sand.u32 1, %s4248_s24  }
 0x72a   : > { %p5070_p9 = scmp.ne.s32.totalorder %s5044_s18, 0  ;;  %s2862_s16 = scalar_lea.sflag [#allocation6], %s2861_s19 }
 0x72c   : > { %p3646_p1 = pnand %p3666_p8, %p5070_p9 }
 0x72e   : > { %4243 = dma.done.wait (!%p3646_p1), %s2862_s16, 256  }
 0x72f   : > { %4245 = vsyncadd (!%p3646_p1), %s2862_s16, 4294967040  ;;  %s37_s30 = sadd.s32 1, %s4276_s30   ;;  %s5071_s24 = smov %s4252_s25 }
 0x730   : > { %p34_p11 = scmp.ge.s32.totalorder %s37_s30, 8   ;;  %s5072_s25 = smov %s4256_s26 }
 0x731   : > { %s5073_s26 = smov %s4679_s2  ;;  %s5074_s27 = smov %s4268_s29 }
 0x732   : > { %s5075_s28 = smov %s4272_s0  ;;  %s5076_s29 = smov %s5079_s22 }
 0x733   : > { %s5077_s0 = smov %s5083_s14  ;;  %36 = sbr.rel (!%p34_p11) target bundleno = 27 (0x1b), region = 174 }
 0x73a   :  { %2867 = vsyncpa [#allocation5], 1 }
 0x73b   :  { %2869 = vsyncpa [#allocation5 + $0x1], 1 }
 0x73c   :  { %2870 = vsyncpa [#allocation8], 1 }
 0x73d   :  { %2871 = vsyncpa [#allocation11], 1 }
 0x73e   :  { %2872 = vsyncpa [#allocation14], 1 }
 0x73f   :  { %2873 = vsyncpa [#allocation17], 1 }
 0x740   :  { %2874 = vsyncpa [#allocation6], 1 }
 0x741   :  { %2876 = vsyncpa [#allocation6 + $0x1], 1 }

</bundles_post_ra>
